<compile_context>
chip_gen: v7x
topology: tpu7x:2x2x1
jax: 0.10.0
libtpu: 0.0.40
codegen_flags: <defaults>
</compile_context>

<pallas_src>
import jax
import jax.numpy as jnp
from jax import lax
from jax.experimental import pallas as pl
from jax.experimental.pallas import tpu as pltpu


# ---------------------------------------------------------------------------
# Small helpers
# ---------------------------------------------------------------------------
def _round_up(x, m):
    return (x + m - 1) // m * m


def _pick_time_chunk(T):
    """Timesteps per grid step (8-32 preferred); must divide T exactly."""
    for tc in (32, 16, 8, 4, 2, 1):
        if T % tc == 0:
            return tc
    return 1


def _pick_batch_block(Bp):
    """Split the (padded) batch into two blocks when possible so the
    'parallel' grid axis can be sharded across v7x's 2 TensorCores."""
    if Bp % 16 == 0:
        return Bp // 2
    return Bp


_VMEM_LIMIT = 48 * 1024 * 1024  # fits v7x's 64 MiB physical VMEM with headroom


# ---------------------------------------------------------------------------
# Pallas kernels
# ---------------------------------------------------------------------------
def _lstm_step(gates_x, whh, h, c):
    """One LSTM cell update.

    gates_x: (bb, 4Hp) f32, already contains x_t @ W_ih + (b_ih + b_hh)
    whh:     (Hp, 4Hp) bf16 recurrent weights
    h, c:    (bb, Hp)  f32 state
    Gate layout along the 4Hp axis is [i | f | g | o], each slice Hp wide
    (lane-aligned since Hp is a multiple of 128).
    """
    hp = h.shape[-1]
    gates = gates_x + jnp.dot(h.astype(whh.dtype), whh,
                              preferred_element_type=jnp.float32)
    i_g = jax.nn.sigmoid(gates[:, 0 * hp:1 * hp])
    f_g = jax.nn.sigmoid(gates[:, 1 * hp:2 * hp])
    g_g = jnp.tanh(gates[:, 2 * hp:3 * hp])
    o_g = jax.nn.sigmoid(gates[:, 3 * hp:4 * hp])
    c_new = f_g * c + i_g * g_g
    h_new = o_g * jnp.tanh(c_new)
    return h_new, c_new


def _lstm_seq_kernel(gx_ref, whh_ref, y_ref, h_scr, c_scr):
    """Recurrence for an intermediate LSTM layer (writes the hidden sequence).

    gx_ref:  (tc, bb, 4Hp) precomputed input gates for this time chunk
    whh_ref: (Hp, 4Hp)     bf16 recurrent weights, resident across the grid
    y_ref:   (tc, bb, Hp)  hidden-state sequence output for this chunk
    h_scr, c_scr: (bb, Hp) recurrent state, persists across time chunks
    """
    @pl.when(pl.program_id(1) == 0)
    def _():
        h_scr[...] = jnp.zeros_like(h_scr)
        c_scr[...] = jnp.zeros_like(c_scr)

    whh = whh_ref[...]
    tc = gx_ref.shape[0]

    def body(t, carry):
        h_new, c_new = _lstm_step(gx_ref[t], whh, h_scr[...], c_scr[...])
        h_scr[...] = h_new
        c_scr[...] = c_new
        y_ref[t] = h_new.astype(y_ref.dtype)
        return carry

    lax.fori_loop(0, tc, body, 0, unroll=True)


def _lstm_last_kernel(gx_ref, whh_ref, wout_ref, bout_ref, out_ref,
                      h_scr, c_scr):
    """Last LSTM layer: no sequence writeback; the final Linear is fused in
    at the last time chunk (== output[:, -1, :] @ W_out + b_out)."""
    @pl.when(pl.program_id(1) == 0)
    def _():
        h_scr[...] = jnp.zeros_like(h_scr)
        c_scr[...] = jnp.zeros_like(c_scr)

    whh = whh_ref[...]
    tc = gx_ref.shape[0]

    def body(t, carry):
        h_new, c_new = _lstm_step(gx_ref[t], whh, h_scr[...], c_scr[...])
        h_scr[...] = h_new
        c_scr[...] = c_new
        return carry

    lax.fori_loop(0, tc, body, 0, unroll=True)

    @pl.when(pl.program_id(1) == pl.num_programs(1) - 1)
    def _():
        out_ref[...] = (jnp.dot(h_scr[...], wout_ref[...],
                                preferred_element_type=jnp.float32)
                        + bout_ref[...])


# ---------------------------------------------------------------------------
# pallas_call wrappers
# ---------------------------------------------------------------------------
def _input_projection(x_tbd, wih_t, bias):
    """(T, Bp, D) @ (D, 4Hp) + bias -> (T, Bp, 4Hp).  One big MXU matmul in
    plain XLA, off the serial critical path (cuDNN-style hoist)."""
    T, Bp, D = x_tbd.shape
    g4 = wih_t.shape[1]
    g = jnp.dot(x_tbd.reshape(T * Bp, D), wih_t,
                preferred_element_type=jnp.float32,
                precision=jax.lax.Precision.HIGHEST)
    return (g + bias).reshape(T, Bp, g4)


def _lstm_layer_seq(gx, whh, *, tc, bb):
    T, Bp, G = gx.shape
    Hp = whh.shape[0]
    grid = (Bp // bb, T // tc)
    cost = pl.CostEstimate(
        flops=2 * T * Bp * Hp * G + 10 * T * Bp * Hp,
        transcendentals=4 * T * Bp * Hp,
        bytes_accessed=gx.size * 4 + T * Bp * Hp * 4 + whh.size * 2,
    )
    return pl.pallas_call(
        _lstm_seq_kernel,
        out_shape=jax.ShapeDtypeStruct((T, Bp, Hp), jnp.float32),
        grid_spec=pltpu.PrefetchScalarGridSpec(
            num_scalar_prefetch=0,
            grid=grid,
            in_specs=[
                pl.BlockSpec((tc, bb, G), lambda b, t: (t, b, 0)),
                pl.BlockSpec((Hp, G), lambda b, t: (0, 0)),
            ],
            out_specs=pl.BlockSpec((tc, bb, Hp), lambda b, t: (t, b, 0)),
            scratch_shapes=[pltpu.VMEM((bb, Hp), jnp.float32),
                            pltpu.VMEM((bb, Hp), jnp.float32)],
        ),
        compiler_params=pltpu.CompilerParams(
            dimension_semantics=("parallel", "arbitrary"),
            vmem_limit_bytes=_VMEM_LIMIT,
        ),
        cost_estimate=cost,
    )(gx, whh)


def _lstm_layer_last(gx, whh, wout, bout, *, tc, bb):
    T, Bp, G = gx.shape
    Hp = whh.shape[0]
    Op = wout.shape[1]
    grid = (Bp // bb, T // tc)
    cost = pl.CostEstimate(
        flops=2 * T * Bp * Hp * G + 10 * T * Bp * Hp + 2 * Bp * Hp * Op,
        transcendentals=4 * T * Bp * Hp,
        bytes_accessed=gx.size * 4 + whh.size * 2 + wout.size * 4 + Bp * Op * 4,
    )
    return pl.pallas_call(
        _lstm_last_kernel,
        out_shape=jax.ShapeDtypeStruct((Bp, Op), jnp.float32),
        grid_spec=pltpu.PrefetchScalarGridSpec(
            num_scalar_prefetch=0,
            grid=grid,
            in_specs=[
                pl.BlockSpec((tc, bb, G), lambda b, t: (t, b, 0)),
                pl.BlockSpec((Hp, G), lambda b, t: (0, 0)),
                pl.BlockSpec((Hp, Op), lambda b, t: (0, 0)),
                pl.BlockSpec((1, Op), lambda b, t: (0, 0)),
            ],
            out_specs=pl.BlockSpec((bb, Op), lambda b, t: (b, 0)),
            scratch_shapes=[pltpu.VMEM((bb, Hp), jnp.float32),
                            pltpu.VMEM((bb, Hp), jnp.float32)],
        ),
        compiler_params=pltpu.CompilerParams(
            dimension_semantics=("parallel", "arbitrary"),
            vmem_limit_bytes=_VMEM_LIMIT,
        ),
        cost_estimate=cost,
    )(gx, whh, wout, bout)


# ---------------------------------------------------------------------------
# Parameter preparation (one-time transpose / pad / cast) and forward pass
# ---------------------------------------------------------------------------
def _pad_gates_cols(w_t, rows_pad, H, Hp):
    """(in_dim, 4H) -> (rows_pad, 4Hp), each gate slice placed lane-aligned."""
    in_dim = w_t.shape[0]
    out = jnp.zeros((rows_pad, 4 * Hp), jnp.float32)
    for k in range(4):
        out = out.at[:in_dim, k * Hp:k * Hp + H].set(w_t[:, k * H:(k + 1) * H])
    return out


def _pad_gates_vec(b, H, Hp):
    out = jnp.zeros((4 * Hp,), jnp.float32)
    for k in range(4):
        out = out.at[k * Hp:k * Hp + H].set(b[k * H:(k + 1) * H])
    return out


def prepare_params(params, hidden_size, output_size):
    """Convert PyTorch-layout params into padded / transposed / bf16 kernel
    params ONCE (not per forward call)."""
    H = hidden_size
    Hp = _round_up(H, 128)
    layers = []
    for li, lp in enumerate(params["lstm"]):
        in_dim = lp["w_ih"].shape[1]
        rows = in_dim if li == 0 else Hp          # layer-0 input dim stays raw
        wih_t = _pad_gates_cols(jnp.transpose(lp["w_ih"]), rows, H, Hp)
        whh_t = _pad_gates_cols(jnp.transpose(lp["w_hh"]), Hp, H, Hp)
        whh_t = whh_t.astype(jnp.bfloat16)        # MXU operand; accum stays f32
        bias = _pad_gates_vec(lp["b_ih"] + lp["b_hh"], H, Hp)
        layers.append(dict(wih_t=wih_t, whh_t=whh_t, bias=bias))

    O = output_size
    Op = _round_up(O, 128)
    wout = jnp.zeros((Hp, Op), jnp.float32).at[:H, :O].set(
        jnp.transpose(params["linear"]["w"]))
    bout = jnp.zeros((1, Op), jnp.float32).at[0, :O].set(params["linear"]["b"])
    return dict(layers=layers, wout=wout, bout=bout,
                out_size=O, hidden_pad=Hp)


def lstm_forward(kparams, x):
    """x: (B, T, input_size) batch_first (like the PyTorch module) -> (B, O)."""
    B, T, _ = x.shape
    Bp = _round_up(B, 8)
    O = kparams["out_size"]

    x_tb = jnp.transpose(x, (1, 0, 2)).astype(jnp.float32)    # (T, B, I)
    if Bp != B:
        x_tb = jnp.pad(x_tb, ((0, 0), (0, Bp - B), (0, 0)))

    tc = _pick_time_chunk(T)
    bb = _pick_batch_block(Bp)

    h_seq = x_tb
    n_layers = len(kparams["layers"])
    out_pad = None
    for li, lp in enumerate(kparams["layers"]):
        gx = _input_projection(h_seq, lp["wih_t"], lp["bias"])  # (T, Bp, 4Hp)
        if li == n_layers - 1:
            out_pad = _lstm_layer_last(gx, lp["whh_t"],
                                       kparams["wout"], kparams["bout"],
                                       tc=tc, bb=bb)
        else:
            h_seq = _lstm_layer_seq(gx, lp["whh_t"], tc=tc, bb=bb)
    return out_pad[:B, :O]


# ---------------------------------------------------------------------------
# Deterministic parameter init (PyTorch-style uniform(-1/sqrt(H), 1/sqrt(H)))
# ---------------------------------------------------------------------------
def init_params(key, input_size, hidden_size, output_size, num_layers):
    bound = hidden_size ** -0.5
    params = {"lstm": []}
    for layer in range(num_layers):
        in_sz = input_size if layer == 0 else hidden_size
        key, k1, k2, k3, k4 = jax.random.split(key, 5)
        params["lstm"].append(dict(
            w_ih=jax.random.uniform(k1, (4 * hidden_size, in_sz),
                                    jnp.float32, -bound, bound),
            w_hh=jax.random.uniform(k2, (4 * hidden_size, hidden_size),
                                    jnp.float32, -bound, bound),
            b_ih=jax.random.uniform(k3, (4 * hidden_size,),
                                    jnp.float32, -bound, bound),
            b_hh=jax.random.uniform(k4, (4 * hidden_size,),
                                    jnp.float32, -bound, bound),
        ))
    key, k1, k2 = jax.random.split(key, 3)
    params["linear"] = dict(
        w=jax.random.uniform(k1, (output_size, hidden_size),
                             jnp.float32, -bound, bound),
        b=jax.random.uniform(k2, (output_size,), jnp.float32, -bound, bound),
    )
    return params


# Pure-JAX reference (same math as torch.nn.LSTM + Linear) for a sanity check.
def lstm_ref(params, x):
    B, T, _ = x.shape
    h_seq = x
    for lp in params["lstm"]:
        H = lp["w_hh"].shape[1]
        h = jnp.zeros((B, H), jnp.float32)
        c = jnp.zeros((B, H), jnp.float32)
        outs = []
        for t in range(T):
            gates = (h_seq[:, t, :] @ lp["w_ih"].T + h @ lp["w_hh"].T
                     + lp["b_ih"] + lp["b_hh"])
            i_g, f_g, g_g, o_g = jnp.split(gates, 4, axis=1)
            i_g = jax.nn.sigmoid(i_g)
            f_g = jax.nn.sigmoid(f_g)
            g_g = jnp.tanh(g_g)
            o_g = jax.nn.sigmoid(o_g)
            c = f_g * c + i_g * g_g
            h = o_g * jnp.tanh(c)
            outs.append(h)
        h_seq = jnp.stack(outs, axis=1)
    return h_seq[:, -1, :] @ params["linear"]["w"].T + params["linear"]["b"]


if __name__ == "__main__":
    B, T = 2, 8
    INPUT_SIZE, HIDDEN_SIZE, OUTPUT_SIZE, NUM_LAYERS = 4, 32, 3, 2

    key = jax.random.PRNGKey(0)
    key, pkey, xkey = jax.random.split(key, 3)
    params = init_params(pkey, INPUT_SIZE, HIDDEN_SIZE, OUTPUT_SIZE, NUM_LAYERS)
    x = jax.random.normal(xkey, (B, T, INPUT_SIZE), jnp.float32)

    kparams = prepare_params(params, HIDDEN_SIZE, OUTPUT_SIZE)

    out = jax.block_until_ready(lstm_forward(kparams, x))
    ref = jax.block_until_ready(lstm_ref(params, x))

    assert out.shape == (B, OUTPUT_SIZE), out.shape
    # Tolerance loosened slightly vs the pure-f32 version because W_hh is held
    # in bf16 for the MXU (accumulation and gate math remain f32).
    assert jnp.allclose(out, ref, rtol=2e-2, atol=2e-2), (out, ref)
    print("KERNEL_OK")
</pallas_src>

<mosaic_0001>
module attributes {stable_mosaic.version = 11 : i64} {
  func.func @_lstm_seq_kernel(%arg0: i32, %arg1: i32, %arg2: memref<8x8x512xf32, #tpu.memory_space<vmem>>, %arg3: memref<128x512xbf16, #tpu.memory_space<vmem>>, %arg4: memref<8x8x128xf32, #tpu.memory_space<vmem>>, %arg5: memref<8x128xf32, #tpu.memory_space<vmem>>, %arg6: memref<8x128xf32, #tpu.memory_space<vmem>>) attributes {dimension_semantics = [#tpu.dimension_semantics<parallel>, #tpu.dimension_semantics<arbitrary>], iteration_bounds = array<i64: 1, 1>, scalar_prefetch = 0 : i64, scratch_operands = 2 : i64, tpu.core_type = #tpu.core_type<tc>, window_params = [{transform_indices = @transform_0, window_bounds = array<i64: 8, 8, 512>}, {pipeline_mode = #tpu.pipeline_mode<synchronous>, transform_indices = @transform_1, window_bounds = array<i64: 128, 512>}, {transform_indices = @transform_2, window_bounds = array<i64: 8, 8, 128>}]} {
    %c0_i32 = arith.constant 0 : i32
    %0 = arith.cmpi eq, %arg1, %c0_i32 : i32
    %1 = arith.extui %0 : i1 to i32
    %c0_i32_0 = arith.constant 0 : i32
    %2 = arith.cmpi ne, %1, %c0_i32_0 : i32
    scf.if %2 {
      %cst_130 = arith.constant 0.000000e+00 : f32
      %316 = vector.broadcast %cst_130 : f32 to vector<8x128xf32>
      %c0_131 = arith.constant 0 : index
      %c0_132 = arith.constant 0 : index
      %317 = vector.load %arg5[%c0_131, %c0_132] : memref<8x128xf32, #tpu.memory_space<vmem>>, vector<8x128xf32>
      tpu.vector_store %arg5[%c0_131, %c0_132], %316 {strides = array<i32>} : memref<8x128xf32, #tpu.memory_space<vmem>>, vector<8x128xf32>,
      %cst_133 = arith.constant 0.000000e+00 : f32
      %318 = vector.broadcast %cst_133 : f32 to vector<8x128xf32>
      %c0_134 = arith.constant 0 : index
      %c0_135 = arith.constant 0 : index
      %319 = vector.load %arg6[%c0_134, %c0_135] : memref<8x128xf32, #tpu.memory_space<vmem>>, vector<8x128xf32>
      tpu.vector_store %arg6[%c0_134, %c0_135], %318 {strides = array<i32>} : memref<8x128xf32, #tpu.memory_space<vmem>>, vector<8x128xf32>,
    } else {
    }
    %c0 = arith.constant 0 : index
    %c0_1 = arith.constant 0 : index
    %3 = vector.load %arg3[%c0, %c0_1] : memref<128x512xbf16, #tpu.memory_space<vmem>>, vector<128x512xbf16>
    %c0_i32_2 = arith.constant 0 : i32
    %4 = arith.index_cast %c0_i32_2 : i32 to index
    %c0_3 = arith.constant 0 : index
    %c0_4 = arith.constant 0 : index
    %5 = vector.load %arg2[%4, %c0_3, %c0_4] : memref<8x8x512xf32, #tpu.memory_space<vmem>>, vector<1x8x512xf32>
    %6 = vector.shape_cast %5 : vector<1x8x512xf32> to vector<8x512xf32>
    %c0_5 = arith.constant 0 : index
    %c0_6 = arith.constant 0 : index
    %7 = vector.load %arg5[%c0_5, %c0_6] : memref<8x128xf32, #tpu.memory_space<vmem>>, vector<8x128xf32>
    %c0_7 = arith.constant 0 : index
    %c0_8 = arith.constant 0 : index
    %8 = vector.load %arg6[%c0_7, %c0_8] : memref<8x128xf32, #tpu.memory_space<vmem>>, vector<8x128xf32>
    %9 = arith.truncf %7 : vector<8x128xf32> to vector<8x128xbf16>
    %cst = arith.constant dense<0.000000e+00> : vector<8x512xf32>
    %10 = tpu.matmul %9, %3, %cst {dimension_numbers = #tpu.dot_dimension_numbers<[1], [0], [0], [1], [0, 0, 1, 1], [], []>} : vector<8x128xbf16>, vector<128x512xbf16>, vector<8x512xf32> -> vector<8x512xf32>
    %11 = arith.addf %6, %10 : vector<8x512xf32>
    %12 = vector.extract_strided_slice %11 {offsets = [0, 0], sizes = [8, 128], strides = [1, 1]} : vector<8x512xf32> to vector<8x128xf32>
    %13 = arith.negf %12 : vector<8x128xf32>
    %14 = math.exp %13 : vector<8x128xf32>
    %cst_9 = arith.constant 1.000000e+00 : f32
    %15 = vector.broadcast %cst_9 : f32 to vector<8x128xf32>
    %16 = arith.addf %15, %14 : vector<8x128xf32>
    %17 = arith.divf %15, %16 : vector<8x128xf32>
    %18 = vector.extract_strided_slice %11 {offsets = [0, 128], sizes = [8, 128], strides = [1, 1]} : vector<8x512xf32> to vector<8x128xf32>
    %19 = arith.negf %18 : vector<8x128xf32>
    %20 = math.exp %19 : vector<8x128xf32>
    %cst_10 = arith.constant 1.000000e+00 : f32
    %21 = vector.broadcast %cst_10 : f32 to vector<8x128xf32>
    %22 = arith.addf %21, %20 : vector<8x128xf32>
    %23 = arith.divf %21, %22 : vector<8x128xf32>
    %24 = vector.extract_strided_slice %11 {offsets = [0, 256], sizes = [8, 128], strides = [1, 1]} : vector<8x512xf32> to vector<8x128xf32>
    %25 = math.tanh %24 : vector<8x128xf32>
    %26 = vector.extract_strided_slice %11 {offsets = [0, 384], sizes = [8, 128], strides = [1, 1]} : vector<8x512xf32> to vector<8x128xf32>
    %27 = arith.negf %26 : vector<8x128xf32>
    %28 = math.exp %27 : vector<8x128xf32>
    %cst_11 = arith.constant 1.000000e+00 : f32
    %29 = vector.broadcast %cst_11 : f32 to vector<8x128xf32>
    %30 = arith.addf %29, %28 : vector<8x128xf32>
    %31 = arith.divf %29, %30 : vector<8x128xf32>
    %32 = arith.mulf %23, %8 : vector<8x128xf32>
    %33 = arith.mulf %17, %25 : vector<8x128xf32>
    %34 = arith.addf %32, %33 : vector<8x128xf32>
    %35 = math.tanh %34 : vector<8x128xf32>
    %36 = arith.mulf %31, %35 : vector<8x128xf32>
    %c0_12 = arith.constant 0 : index
    %c0_13 = arith.constant 0 : index
    %37 = vector.load %arg5[%c0_12, %c0_13] : memref<8x128xf32, #tpu.memory_space<vmem>>, vector<8x128xf32>
    tpu.vector_store %arg5[%c0_12, %c0_13], %36 {strides = array<i32>} : memref<8x128xf32, #tpu.memory_space<vmem>>, vector<8x128xf32>,
    %c0_14 = arith.constant 0 : index
    %c0_15 = arith.constant 0 : index
    %38 = vector.load %arg6[%c0_14, %c0_15] : memref<8x128xf32, #tpu.memory_space<vmem>>, vector<8x128xf32>
    tpu.vector_store %arg6[%c0_14, %c0_15], %34 {strides = array<i32>} : memref<8x128xf32, #tpu.memory_space<vmem>>, vector<8x128xf32>,
    %39 = arith.index_cast %c0_i32_2 : i32 to index
    %c0_16 = arith.constant 0 : index
    %c0_17 = arith.constant 0 : index
    %40 = vector.load %arg4[%39, %c0_16, %c0_17] : memref<8x8x128xf32, #tpu.memory_space<vmem>>, vector<1x8x128xf32>
    %41 = vector.shape_cast %40 : vector<1x8x128xf32> to vector<8x128xf32>
    %42 = vector.shape_cast %36 : vector<8x128xf32> to vector<1x8x128xf32>
    tpu.vector_store %arg4[%39, %c0_16, %c0_17], %42 {strides = array<i32>} : memref<8x8x128xf32, #tpu.memory_space<vmem>>, vector<1x8x128xf32>,
    %c1_i32 = arith.constant 1 : i32
    %43 = arith.index_cast %c1_i32 : i32 to index
    %c0_18 = arith.constant 0 : index
    %c0_19 = arith.constant 0 : index
    %44 = vector.load %arg2[%43, %c0_18, %c0_19] : memref<8x8x512xf32, #tpu.memory_space<vmem>>, vector<1x8x512xf32>
    %45 = vector.shape_cast %44 : vector<1x8x512xf32> to vector<8x512xf32>
    %c0_20 = arith.constant 0 : index
    %c0_21 = arith.constant 0 : index
    %46 = vector.load %arg5[%c0_20, %c0_21] : memref<8x128xf32, #tpu.memory_space<vmem>>, vector<8x128xf32>
    %c0_22 = arith.constant 0 : index
    %c0_23 = arith.constant 0 : index
    %47 = vector.load %arg6[%c0_22, %c0_23] : memref<8x128xf32, #tpu.memory_space<vmem>>, vector<8x128xf32>
    %48 = arith.truncf %46 : vector<8x128xf32> to vector<8x128xbf16>
    %cst_24 = arith.constant dense<0.000000e+00> : vector<8x512xf32>
    %49 = tpu.matmul %48, %3, %cst_24 {dimension_numbers = #tpu.dot_dimension_numbers<[1], [0], [0], [1], [0, 0, 1, 1], [], []>} : vector<8x128xbf16>, vector<128x512xbf16>, vector<8x512xf32> -> vector<8x512xf32>
    %50 = arith.addf %45, %49 : vector<8x512xf32>
    %51 = vector.extract_strided_slice %50 {offsets = [0, 0], sizes = [8, 128], strides = [1, 1]} : vector<8x512xf32> to vector<8x128xf32>
    %52 = arith.negf %51 : vector<8x128xf32>
    %53 = math.exp %52 : vector<8x128xf32>
    %cst_25 = arith.constant 1.000000e+00 : f32
    %54 = vector.broadcast %cst_25 : f32 to vector<8x128xf32>
    %55 = arith.addf %54, %53 : vector<8x128xf32>
    %56 = arith.divf %54, %55 : vector<8x128xf32>
    %57 = vector.extract_strided_slice %50 {offsets = [0, 128], sizes = [8, 128], strides = [1, 1]} : vector<8x512xf32> to vector<8x128xf32>
    %58 = arith.negf %57 : vector<8x128xf32>
    %59 = math.exp %58 : vector<8x128xf32>
    %cst_26 = arith.constant 1.000000e+00 : f32
    %60 = vector.broadcast %cst_26 : f32 to vector<8x128xf32>
    %61 = arith.addf %60, %59 : vector<8x128xf32>
    %62 = arith.divf %60, %61 : vector<8x128xf32>
    %63 = vector.extract_strided_slice %50 {offsets = [0, 256], sizes = [8, 128], strides = [1, 1]} : vector<8x512xf32> to vector<8x128xf32>
    %64 = math.tanh %63 : vector<8x128xf32>
    %65 = vector.extract_strided_slice %50 {offsets = [0, 384], sizes = [8, 128], strides = [1, 1]} : vector<8x512xf32> to vector<8x128xf32>
    %66 = arith.negf %65 : vector<8x128xf32>
    %67 = math.exp %66 : vector<8x128xf32>
    %cst_27 = arith.constant 1.000000e+00 : f32
    %68 = vector.broadcast %cst_27 : f32 to vector<8x128xf32>
    %69 = arith.addf %68, %67 : vector<8x128xf32>
    %70 = arith.divf %68, %69 : vector<8x128xf32>
    %71 = arith.mulf %62, %47 : vector<8x128xf32>
    %72 = arith.mulf %56, %64 : vector<8x128xf32>
    %73 = arith.addf %71, %72 : vector<8x128xf32>
    %74 = math.tanh %73 : vector<8x128xf32>
    %75 = arith.mulf %70, %74 : vector<8x128xf32>
    %c0_28 = arith.constant 0 : index
    %c0_29 = arith.constant 0 : index
    %76 = vector.load %arg5[%c0_28, %c0_29] : memref<8x128xf32, #tpu.memory_space<vmem>>, vector<8x128xf32>
    tpu.vector_store %arg5[%c0_28, %c0_29], %75 {strides = array<i32>} : memref<8x128xf32, #tpu.memory_space<vmem>>, vector<8x128xf32>,
    %c0_30 = arith.constant 0 : index
    %c0_31 = arith.constant 0 : index
    %77 = vector.load %arg6[%c0_30, %c0_31] : memref<8x128xf32, #tpu.memory_space<vmem>>, vector<8x128xf32>
    tpu.vector_store %arg6[%c0_30, %c0_31], %73 {strides = array<i32>} : memref<8x128xf32, #tpu.memory_space<vmem>>, vector<8x128xf32>,
    %78 = arith.index_cast %c1_i32 : i32 to index
    %c0_32 = arith.constant 0 : index
    %c0_33 = arith.constant 0 : index
    %79 = vector.load %arg4[%78, %c0_32, %c0_33] : memref<8x8x128xf32, #tpu.memory_space<vmem>>, vector<1x8x128xf32>
    %80 = vector.shape_cast %79 : vector<1x8x128xf32> to vector<8x128xf32>
    %81 = vector.shape_cast %75 : vector<8x128xf32> to vector<1x8x128xf32>
    tpu.vector_store %arg4[%78, %c0_32, %c0_33], %81 {strides = array<i32>} : memref<8x8x128xf32, #tpu.memory_space<vmem>>, vector<1x8x128xf32>,
    %c2_i32 = arith.constant 2 : i32
    %82 = arith.index_cast %c2_i32 : i32 to index
    %c0_34 = arith.constant 0 : index
    %c0_35 = arith.constant 0 : index
    %83 = vector.load %arg2[%82, %c0_34, %c0_35] : memref<8x8x512xf32, #tpu.memory_space<vmem>>, vector<1x8x512xf32>
    %84 = vector.shape_cast %83 : vector<1x8x512xf32> to vector<8x512xf32>
    %c0_36 = arith.constant 0 : index
    %c0_37 = arith.constant 0 : index
    %85 = vector.load %arg5[%c0_36, %c0_37] : memref<8x128xf32, #tpu.memory_space<vmem>>, vector<8x128xf32>
    %c0_38 = arith.constant 0 : index
    %c0_39 = arith.constant 0 : index
    %86 = vector.load %arg6[%c0_38, %c0_39] : memref<8x128xf32, #tpu.memory_space<vmem>>, vector<8x128xf32>
    %87 = arith.truncf %85 : vector<8x128xf32> to vector<8x128xbf16>
    %cst_40 = arith.constant dense<0.000000e+00> : vector<8x512xf32>
    %88 = tpu.matmul %87, %3, %cst_40 {dimension_numbers = #tpu.dot_dimension_numbers<[1], [0], [0], [1], [0, 0, 1, 1], [], []>} : vector<8x128xbf16>, vector<128x512xbf16>, vector<8x512xf32> -> vector<8x512xf32>
    %89 = arith.addf %84, %88 : vector<8x512xf32>
    %90 = vector.extract_strided_slice %89 {offsets = [0, 0], sizes = [8, 128], strides = [1, 1]} : vector<8x512xf32> to vector<8x128xf32>
    %91 = arith.negf %90 : vector<8x128xf32>
    %92 = math.exp %91 : vector<8x128xf32>
    %cst_41 = arith.constant 1.000000e+00 : f32
    %93 = vector.broadcast %cst_41 : f32 to vector<8x128xf32>
    %94 = arith.addf %93, %92 : vector<8x128xf32>
    %95 = arith.divf %93, %94 : vector<8x128xf32>
    %96 = vector.extract_strided_slice %89 {offsets = [0, 128], sizes = [8, 128], strides = [1, 1]} : vector<8x512xf32> to vector<8x128xf32>
    %97 = arith.negf %96 : vector<8x128xf32>
    %98 = math.exp %97 : vector<8x128xf32>
    %cst_42 = arith.constant 1.000000e+00 : f32
    %99 = vector.broadcast %cst_42 : f32 to vector<8x128xf32>
    %100 = arith.addf %99, %98 : vector<8x128xf32>
    %101 = arith.divf %99, %100 : vector<8x128xf32>
    %102 = vector.extract_strided_slice %89 {offsets = [0, 256], sizes = [8, 128], strides = [1, 1]} : vector<8x512xf32> to vector<8x128xf32>
    %103 = math.tanh %102 : vector<8x128xf32>
    %104 = vector.extract_strided_slice %89 {offsets = [0, 384], sizes = [8, 128], strides = [1, 1]} : vector<8x512xf32> to vector<8x128xf32>
    %105 = arith.negf %104 : vector<8x128xf32>
    %106 = math.exp %105 : vector<8x128xf32>
    %cst_43 = arith.constant 1.000000e+00 : f32
    %107 = vector.broadcast %cst_43 : f32 to vector<8x128xf32>
    %108 = arith.addf %107, %106 : vector<8x128xf32>
    %109 = arith.divf %107, %108 : vector<8x128xf32>
    %110 = arith.mulf %101, %86 : vector<8x128xf32>
    %111 = arith.mulf %95, %103 : vector<8x128xf32>
    %112 = arith.addf %110, %111 : vector<8x128xf32>
    %113 = math.tanh %112 : vector<8x128xf32>
    %114 = arith.mulf %109, %113 : vector<8x128xf32>
    %c0_44 = arith.constant 0 : index
    %c0_45 = arith.constant 0 : index
    %115 = vector.load %arg5[%c0_44, %c0_45] : memref<8x128xf32, #tpu.memory_space<vmem>>, vector<8x128xf32>
    tpu.vector_store %arg5[%c0_44, %c0_45], %114 {strides = array<i32>} : memref<8x128xf32, #tpu.memory_space<vmem>>, vector<8x128xf32>,
    %c0_46 = arith.constant 0 : index
    %c0_47 = arith.constant 0 : index
    %116 = vector.load %arg6[%c0_46, %c0_47] : memref<8x128xf32, #tpu.memory_space<vmem>>, vector<8x128xf32>
    tpu.vector_store %arg6[%c0_46, %c0_47], %112 {strides = array<i32>} : memref<8x128xf32, #tpu.memory_space<vmem>>, vector<8x128xf32>,
    %117 = arith.index_cast %c2_i32 : i32 to index
    %c0_48 = arith.constant 0 : index
    %c0_49 = arith.constant 0 : index
    %118 = vector.load %arg4[%117, %c0_48, %c0_49] : memref<8x8x128xf32, #tpu.memory_space<vmem>>, vector<1x8x128xf32>
    %119 = vector.shape_cast %118 : vector<1x8x128xf32> to vector<8x128xf32>
    %120 = vector.shape_cast %114 : vector<8x128xf32> to vector<1x8x128xf32>
    tpu.vector_store %arg4[%117, %c0_48, %c0_49], %120 {strides = array<i32>} : memref<8x8x128xf32, #tpu.memory_space<vmem>>, vector<1x8x128xf32>,
    %c3_i32 = arith.constant 3 : i32
    %121 = arith.index_cast %c3_i32 : i32 to index
    %c0_50 = arith.constant 0 : index
    %c0_51 = arith.constant 0 : index
    %122 = vector.load %arg2[%121, %c0_50, %c0_51] : memref<8x8x512xf32, #tpu.memory_space<vmem>>, vector<1x8x512xf32>
    %123 = vector.shape_cast %122 : vector<1x8x512xf32> to vector<8x512xf32>
    %c0_52 = arith.constant 0 : index
    %c0_53 = arith.constant 0 : index
    %124 = vector.load %arg5[%c0_52, %c0_53] : memref<8x128xf32, #tpu.memory_space<vmem>>, vector<8x128xf32>
    %c0_54 = arith.constant 0 : index
    %c0_55 = arith.constant 0 : index
    %125 = vector.load %arg6[%c0_54, %c0_55] : memref<8x128xf32, #tpu.memory_space<vmem>>, vector<8x128xf32>
    %126 = arith.truncf %124 : vector<8x128xf32> to vector<8x128xbf16>
    %cst_56 = arith.constant dense<0.000000e+00> : vector<8x512xf32>
    %127 = tpu.matmul %126, %3, %cst_56 {dimension_numbers = #tpu.dot_dimension_numbers<[1], [0], [0], [1], [0, 0, 1, 1], [], []>} : vector<8x128xbf16>, vector<128x512xbf16>, vector<8x512xf32> -> vector<8x512xf32>
    %128 = arith.addf %123, %127 : vector<8x512xf32>
    %129 = vector.extract_strided_slice %128 {offsets = [0, 0], sizes = [8, 128], strides = [1, 1]} : vector<8x512xf32> to vector<8x128xf32>
    %130 = arith.negf %129 : vector<8x128xf32>
    %131 = math.exp %130 : vector<8x128xf32>
    %cst_57 = arith.constant 1.000000e+00 : f32
    %132 = vector.broadcast %cst_57 : f32 to vector<8x128xf32>
    %133 = arith.addf %132, %131 : vector<8x128xf32>
    %134 = arith.divf %132, %133 : vector<8x128xf32>
    %135 = vector.extract_strided_slice %128 {offsets = [0, 128], sizes = [8, 128], strides = [1, 1]} : vector<8x512xf32> to vector<8x128xf32>
    %136 = arith.negf %135 : vector<8x128xf32>
    %137 = math.exp %136 : vector<8x128xf32>
    %cst_58 = arith.constant 1.000000e+00 : f32
    %138 = vector.broadcast %cst_58 : f32 to vector<8x128xf32>
    %139 = arith.addf %138, %137 : vector<8x128xf32>
    %140 = arith.divf %138, %139 : vector<8x128xf32>
    %141 = vector.extract_strided_slice %128 {offsets = [0, 256], sizes = [8, 128], strides = [1, 1]} : vector<8x512xf32> to vector<8x128xf32>
    %142 = math.tanh %141 : vector<8x128xf32>
    %143 = vector.extract_strided_slice %128 {offsets = [0, 384], sizes = [8, 128], strides = [1, 1]} : vector<8x512xf32> to vector<8x128xf32>
    %144 = arith.negf %143 : vector<8x128xf32>
    %145 = math.exp %144 : vector<8x128xf32>
    %cst_59 = arith.constant 1.000000e+00 : f32
    %146 = vector.broadcast %cst_59 : f32 to vector<8x128xf32>
    %147 = arith.addf %146, %145 : vector<8x128xf32>
    %148 = arith.divf %146, %147 : vector<8x128xf32>
    %149 = arith.mulf %140, %125 : vector<8x128xf32>
    %150 = arith.mulf %134, %142 : vector<8x128xf32>
    %151 = arith.addf %149, %150 : vector<8x128xf32>
    %152 = math.tanh %151 : vector<8x128xf32>
    %153 = arith.mulf %148, %152 : vector<8x128xf32>
    %c0_60 = arith.constant 0 : index
    %c0_61 = arith.constant 0 : index
    %154 = vector.load %arg5[%c0_60, %c0_61] : memref<8x128xf32, #tpu.memory_space<vmem>>, vector<8x128xf32>
    tpu.vector_store %arg5[%c0_60, %c0_61], %153 {strides = array<i32>} : memref<8x128xf32, #tpu.memory_space<vmem>>, vector<8x128xf32>,
    %c0_62 = arith.constant 0 : index
    %c0_63 = arith.constant 0 : index
    %155 = vector.load %arg6[%c0_62, %c0_63] : memref<8x128xf32, #tpu.memory_space<vmem>>, vector<8x128xf32>
    tpu.vector_store %arg6[%c0_62, %c0_63], %151 {strides = array<i32>} : memref<8x128xf32, #tpu.memory_space<vmem>>, vector<8x128xf32>,
    %156 = arith.index_cast %c3_i32 : i32 to index
    %c0_64 = arith.constant 0 : index
    %c0_65 = arith.constant 0 : index
    %157 = vector.load %arg4[%156, %c0_64, %c0_65] : memref<8x8x128xf32, #tpu.memory_space<vmem>>, vector<1x8x128xf32>
    %158 = vector.shape_cast %157 : vector<1x8x128xf32> to vector<8x128xf32>
    %159 = vector.shape_cast %153 : vector<8x128xf32> to vector<1x8x128xf32>
    tpu.vector_store %arg4[%156, %c0_64, %c0_65], %159 {strides = array<i32>} : memref<8x8x128xf32, #tpu.memory_space<vmem>>, vector<1x8x128xf32>,
    %c4_i32 = arith.constant 4 : i32
    %160 = arith.index_cast %c4_i32 : i32 to index
    %c0_66 = arith.constant 0 : index
    %c0_67 = arith.constant 0 : index
    %161 = vector.load %arg2[%160, %c0_66, %c0_67] : memref<8x8x512xf32, #tpu.memory_space<vmem>>, vector<1x8x512xf32>
    %162 = vector.shape_cast %161 : vector<1x8x512xf32> to vector<8x512xf32>
    %c0_68 = arith.constant 0 : index
    %c0_69 = arith.constant 0 : index
    %163 = vector.load %arg5[%c0_68, %c0_69] : memref<8x128xf32, #tpu.memory_space<vmem>>, vector<8x128xf32>
    %c0_70 = arith.constant 0 : index
    %c0_71 = arith.constant 0 : index
    %164 = vector.load %arg6[%c0_70, %c0_71] : memref<8x128xf32, #tpu.memory_space<vmem>>, vector<8x128xf32>
    %165 = arith.truncf %163 : vector<8x128xf32> to vector<8x128xbf16>
    %cst_72 = arith.constant dense<0.000000e+00> : vector<8x512xf32>
    %166 = tpu.matmul %165, %3, %cst_72 {dimension_numbers = #tpu.dot_dimension_numbers<[1], [0], [0], [1], [0, 0, 1, 1], [], []>} : vector<8x128xbf16>, vector<128x512xbf16>, vector<8x512xf32> -> vector<8x512xf32>
    %167 = arith.addf %162, %166 : vector<8x512xf32>
    %168 = vector.extract_strided_slice %167 {offsets = [0, 0], sizes = [8, 128], strides = [1, 1]} : vector<8x512xf32> to vector<8x128xf32>
    %169 = arith.negf %168 : vector<8x128xf32>
    %170 = math.exp %169 : vector<8x128xf32>
    %cst_73 = arith.constant 1.000000e+00 : f32
    %171 = vector.broadcast %cst_73 : f32 to vector<8x128xf32>
    %172 = arith.addf %171, %170 : vector<8x128xf32>
    %173 = arith.divf %171, %172 : vector<8x128xf32>
    %174 = vector.extract_strided_slice %167 {offsets = [0, 128], sizes = [8, 128], strides = [1, 1]} : vector<8x512xf32> to vector<8x128xf32>
    %175 = arith.negf %174 : vector<8x128xf32>
    %176 = math.exp %175 : vector<8x128xf32>
    %cst_74 = arith.constant 1.000000e+00 : f32
    %177 = vector.broadcast %cst_74 : f32 to vector<8x128xf32>
    %178 = arith.addf %177, %176 : vector<8x128xf32>
    %179 = arith.divf %177, %178 : vector<8x128xf32>
    %180 = vector.extract_strided_slice %167 {offsets = [0, 256], sizes = [8, 128], strides = [1, 1]} : vector<8x512xf32> to vector<8x128xf32>
    %181 = math.tanh %180 : vector<8x128xf32>
    %182 = vector.extract_strided_slice %167 {offsets = [0, 384], sizes = [8, 128], strides = [1, 1]} : vector<8x512xf32> to vector<8x128xf32>
    %183 = arith.negf %182 : vector<8x128xf32>
    %184 = math.exp %183 : vector<8x128xf32>
    %cst_75 = arith.constant 1.000000e+00 : f32
    %185 = vector.broadcast %cst_75 : f32 to vector<8x128xf32>
    %186 = arith.addf %185, %184 : vector<8x128xf32>
    %187 = arith.divf %185, %186 : vector<8x128xf32>
    %188 = arith.mulf %179, %164 : vector<8x128xf32>
    %189 = arith.mulf %173, %181 : vector<8x128xf32>
    %190 = arith.addf %188, %189 : vector<8x128xf32>
    %191 = math.tanh %190 : vector<8x128xf32>
    %192 = arith.mulf %187, %191 : vector<8x128xf32>
    %c0_76 = arith.constant 0 : index
    %c0_77 = arith.constant 0 : index
    %193 = vector.load %arg5[%c0_76, %c0_77] : memref<8x128xf32, #tpu.memory_space<vmem>>, vector<8x128xf32>
    tpu.vector_store %arg5[%c0_76, %c0_77], %192 {strides = array<i32>} : memref<8x128xf32, #tpu.memory_space<vmem>>, vector<8x128xf32>,
    %c0_78 = arith.constant 0 : index
    %c0_79 = arith.constant 0 : index
    %194 = vector.load %arg6[%c0_78, %c0_79] : memref<8x128xf32, #tpu.memory_space<vmem>>, vector<8x128xf32>
    tpu.vector_store %arg6[%c0_78, %c0_79], %190 {strides = array<i32>} : memref<8x128xf32, #tpu.memory_space<vmem>>, vector<8x128xf32>,
    %195 = arith.index_cast %c4_i32 : i32 to index
    %c0_80 = arith.constant 0 : index
    %c0_81 = arith.constant 0 : index
    %196 = vector.load %arg4[%195, %c0_80, %c0_81] : memref<8x8x128xf32, #tpu.memory_space<vmem>>, vector<1x8x128xf32>
    %197 = vector.shape_cast %196 : vector<1x8x128xf32> to vector<8x128xf32>
    %198 = vector.shape_cast %192 : vector<8x128xf32> to vector<1x8x128xf32>
    tpu.vector_store %arg4[%195, %c0_80, %c0_81], %198 {strides = array<i32>} : memref<8x8x128xf32, #tpu.memory_space<vmem>>, vector<1x8x128xf32>,
    %c5_i32 = arith.constant 5 : i32
    %199 = arith.index_cast %c5_i32 : i32 to index
    %c0_82 = arith.constant 0 : index
    %c0_83 = arith.constant 0 : index
    %200 = vector.load %arg2[%199, %c0_82, %c0_83] : memref<8x8x512xf32, #tpu.memory_space<vmem>>, vector<1x8x512xf32>
    %201 = vector.shape_cast %200 : vector<1x8x512xf32> to vector<8x512xf32>
    %c0_84 = arith.constant 0 : index
    %c0_85 = arith.constant 0 : index
    %202 = vector.load %arg5[%c0_84, %c0_85] : memref<8x128xf32, #tpu.memory_space<vmem>>, vector<8x128xf32>
    %c0_86 = arith.constant 0 : index
    %c0_87 = arith.constant 0 : index
    %203 = vector.load %arg6[%c0_86, %c0_87] : memref<8x128xf32, #tpu.memory_space<vmem>>, vector<8x128xf32>
    %204 = arith.truncf %202 : vector<8x128xf32> to vector<8x128xbf16>
    %cst_88 = arith.constant dense<0.000000e+00> : vector<8x512xf32>
    %205 = tpu.matmul %204, %3, %cst_88 {dimension_numbers = #tpu.dot_dimension_numbers<[1], [0], [0], [1], [0, 0, 1, 1], [], []>} : vector<8x128xbf16>, vector<128x512xbf16>, vector<8x512xf32> -> vector<8x512xf32>
    %206 = arith.addf %201, %205 : vector<8x512xf32>
    %207 = vector.extract_strided_slice %206 {offsets = [0, 0], sizes = [8, 128], strides = [1, 1]} : vector<8x512xf32> to vector<8x128xf32>
    %208 = arith.negf %207 : vector<8x128xf32>
    %209 = math.exp %208 : vector<8x128xf32>
    %cst_89 = arith.constant 1.000000e+00 : f32
    %210 = vector.broadcast %cst_89 : f32 to vector<8x128xf32>
    %211 = arith.addf %210, %209 : vector<8x128xf32>
    %212 = arith.divf %210, %211 : vector<8x128xf32>
    %213 = vector.extract_strided_slice %206 {offsets = [0, 128], sizes = [8, 128], strides = [1, 1]} : vector<8x512xf32> to vector<8x128xf32>
    %214 = arith.negf %213 : vector<8x128xf32>
    %215 = math.exp %214 : vector<8x128xf32>
    %cst_90 = arith.constant 1.000000e+00 : f32
    %216 = vector.broadcast %cst_90 : f32 to vector<8x128xf32>
    %217 = arith.addf %216, %215 : vector<8x128xf32>
    %218 = arith.divf %216, %217 : vector<8x128xf32>
    %219 = vector.extract_strided_slice %206 {offsets = [0, 256], sizes = [8, 128], strides = [1, 1]} : vector<8x512xf32> to vector<8x128xf32>
    %220 = math.tanh %219 : vector<8x128xf32>
    %221 = vector.extract_strided_slice %206 {offsets = [0, 384], sizes = [8, 128], strides = [1, 1]} : vector<8x512xf32> to vector<8x128xf32>
    %222 = arith.negf %221 : vector<8x128xf32>
    %223 = math.exp %222 : vector<8x128xf32>
    %cst_91 = arith.constant 1.000000e+00 : f32
    %224 = vector.broadcast %cst_91 : f32 to vector<8x128xf32>
    %225 = arith.addf %224, %223 : vector<8x128xf32>
    %226 = arith.divf %224, %225 : vector<8x128xf32>
    %227 = arith.mulf %218, %203 : vector<8x128xf32>
    %228 = arith.mulf %212, %220 : vector<8x128xf32>
    %229 = arith.addf %227, %228 : vector<8x128xf32>
    %230 = math.tanh %229 : vector<8x128xf32>
    %231 = arith.mulf %226, %230 : vector<8x128xf32>
    %c0_92 = arith.constant 0 : index
    %c0_93 = arith.constant 0 : index
    %232 = vector.load %arg5[%c0_92, %c0_93] : memref<8x128xf32, #tpu.memory_space<vmem>>, vector<8x128xf32>
    tpu.vector_store %arg5[%c0_92, %c0_93], %231 {strides = array<i32>} : memref<8x128xf32, #tpu.memory_space<vmem>>, vector<8x128xf32>,
    %c0_94 = arith.constant 0 : index
    %c0_95 = arith.constant 0 : index
    %233 = vector.load %arg6[%c0_94, %c0_95] : memref<8x128xf32, #tpu.memory_space<vmem>>, vector<8x128xf32>
    tpu.vector_store %arg6[%c0_94, %c0_95], %229 {strides = array<i32>} : memref<8x128xf32, #tpu.memory_space<vmem>>, vector<8x128xf32>,
    %234 = arith.index_cast %c5_i32 : i32 to index
    %c0_96 = arith.constant 0 : index
    %c0_97 = arith.constant 0 : index
    %235 = vector.load %arg4[%234, %c0_96, %c0_97] : memref<8x8x128xf32, #tpu.memory_space<vmem>>, vector<1x8x128xf32>
    %236 = vector.shape_cast %235 : vector<1x8x128xf32> to vector<8x128xf32>
    %237 = vector.shape_cast %231 : vector<8x128xf32> to vector<1x8x128xf32>
    tpu.vector_store %arg4[%234, %c0_96, %c0_97], %237 {strides = array<i32>} : memref<8x8x128xf32, #tpu.memory_space<vmem>>, vector<1x8x128xf32>,
    %c6_i32 = arith.constant 6 : i32
    %238 = arith.index_cast %c6_i32 : i32 to index
    %c0_98 = arith.constant 0 : index
    %c0_99 = arith.constant 0 : index
    %239 = vector.load %arg2[%238, %c0_98, %c0_99] : memref<8x8x512xf32, #tpu.memory_space<vmem>>, vector<1x8x512xf32>
    %240 = vector.shape_cast %239 : vector<1x8x512xf32> to vector<8x512xf32>
    %c0_100 = arith.constant 0 : index
    %c0_101 = arith.constant 0 : index
    %241 = vector.load %arg5[%c0_100, %c0_101] : memref<8x128xf32, #tpu.memory_space<vmem>>, vector<8x128xf32>
    %c0_102 = arith.constant 0 : index
    %c0_103 = arith.constant 0 : index
    %242 = vector.load %arg6[%c0_102, %c0_103] : memref<8x128xf32, #tpu.memory_space<vmem>>, vector<8x128xf32>
    %243 = arith.truncf %241 : vector<8x128xf32> to vector<8x128xbf16>
    %cst_104 = arith.constant dense<0.000000e+00> : vector<8x512xf32>
    %244 = tpu.matmul %243, %3, %cst_104 {dimension_numbers = #tpu.dot_dimension_numbers<[1], [0], [0], [1], [0, 0, 1, 1], [], []>} : vector<8x128xbf16>, vector<128x512xbf16>, vector<8x512xf32> -> vector<8x512xf32>
    %245 = arith.addf %240, %244 : vector<8x512xf32>
    %246 = vector.extract_strided_slice %245 {offsets = [0, 0], sizes = [8, 128], strides = [1, 1]} : vector<8x512xf32> to vector<8x128xf32>
    %247 = arith.negf %246 : vector<8x128xf32>
    %248 = math.exp %247 : vector<8x128xf32>
    %cst_105 = arith.constant 1.000000e+00 : f32
    %249 = vector.broadcast %cst_105 : f32 to vector<8x128xf32>
    %250 = arith.addf %249, %248 : vector<8x128xf32>
    %251 = arith.divf %249, %250 : vector<8x128xf32>
    %252 = vector.extract_strided_slice %245 {offsets = [0, 128], sizes = [8, 128], strides = [1, 1]} : vector<8x512xf32> to vector<8x128xf32>
    %253 = arith.negf %252 : vector<8x128xf32>
    %254 = math.exp %253 : vector<8x128xf32>
    %cst_106 = arith.constant 1.000000e+00 : f32
    %255 = vector.broadcast %cst_106 : f32 to vector<8x128xf32>
    %256 = arith.addf %255, %254 : vector<8x128xf32>
    %257 = arith.divf %255, %256 : vector<8x128xf32>
    %258 = vector.extract_strided_slice %245 {offsets = [0, 256], sizes = [8, 128], strides = [1, 1]} : vector<8x512xf32> to vector<8x128xf32>
    %259 = math.tanh %258 : vector<8x128xf32>
    %260 = vector.extract_strided_slice %245 {offsets = [0, 384], sizes = [8, 128], strides = [1, 1]} : vector<8x512xf32> to vector<8x128xf32>
    %261 = arith.negf %260 : vector<8x128xf32>
    %262 = math.exp %261 : vector<8x128xf32>
    %cst_107 = arith.constant 1.000000e+00 : f32
    %263 = vector.broadcast %cst_107 : f32 to vector<8x128xf32>
    %264 = arith.addf %263, %262 : vector<8x128xf32>
    %265 = arith.divf %263, %264 : vector<8x128xf32>
    %266 = arith.mulf %257, %242 : vector<8x128xf32>
    %267 = arith.mulf %251, %259 : vector<8x128xf32>
    %268 = arith.addf %266, %267 : vector<8x128xf32>
    %269 = math.tanh %268 : vector<8x128xf32>
    %270 = arith.mulf %265, %269 : vector<8x128xf32>
    %c0_108 = arith.constant 0 : index
    %c0_109 = arith.constant 0 : index
    %271 = vector.load %arg5[%c0_108, %c0_109] : memref<8x128xf32, #tpu.memory_space<vmem>>, vector<8x128xf32>
    tpu.vector_store %arg5[%c0_108, %c0_109], %270 {strides = array<i32>} : memref<8x128xf32, #tpu.memory_space<vmem>>, vector<8x128xf32>,
    %c0_110 = arith.constant 0 : index
    %c0_111 = arith.constant 0 : index
    %272 = vector.load %arg6[%c0_110, %c0_111] : memref<8x128xf32, #tpu.memory_space<vmem>>, vector<8x128xf32>
    tpu.vector_store %arg6[%c0_110, %c0_111], %268 {strides = array<i32>} : memref<8x128xf32, #tpu.memory_space<vmem>>, vector<8x128xf32>,
    %273 = arith.index_cast %c6_i32 : i32 to index
    %c0_112 = arith.constant 0 : index
    %c0_113 = arith.constant 0 : index
    %274 = vector.load %arg4[%273, %c0_112, %c0_113] : memref<8x8x128xf32, #tpu.memory_space<vmem>>, vector<1x8x128xf32>
    %275 = vector.shape_cast %274 : vector<1x8x128xf32> to vector<8x128xf32>
    %276 = vector.shape_cast %270 : vector<8x128xf32> to vector<1x8x128xf32>
    tpu.vector_store %arg4[%273, %c0_112, %c0_113], %276 {strides = array<i32>} : memref<8x8x128xf32, #tpu.memory_space<vmem>>, vector<1x8x128xf32>,
    %c7_i32 = arith.constant 7 : i32
    %277 = arith.index_cast %c7_i32 : i32 to index
    %c0_114 = arith.constant 0 : index
    %c0_115 = arith.constant 0 : index
    %278 = vector.load %arg2[%277, %c0_114, %c0_115] : memref<8x8x512xf32, #tpu.memory_space<vmem>>, vector<1x8x512xf32>
    %279 = vector.shape_cast %278 : vector<1x8x512xf32> to vector<8x512xf32>
    %c0_116 = arith.constant 0 : index
    %c0_117 = arith.constant 0 : index
    %280 = vector.load %arg5[%c0_116, %c0_117] : memref<8x128xf32, #tpu.memory_space<vmem>>, vector<8x128xf32>
    %c0_118 = arith.constant 0 : index
    %c0_119 = arith.constant 0 : index
    %281 = vector.load %arg6[%c0_118, %c0_119] : memref<8x128xf32, #tpu.memory_space<vmem>>, vector<8x128xf32>
    %282 = arith.truncf %280 : vector<8x128xf32> to vector<8x128xbf16>
    %cst_120 = arith.constant dense<0.000000e+00> : vector<8x512xf32>
    %283 = tpu.matmul %282, %3, %cst_120 {dimension_numbers = #tpu.dot_dimension_numbers<[1], [0], [0], [1], [0, 0, 1, 1], [], []>} : vector<8x128xbf16>, vector<128x512xbf16>, vector<8x512xf32> -> vector<8x512xf32>
    %284 = arith.addf %279, %283 : vector<8x512xf32>
    %285 = vector.extract_strided_slice %284 {offsets = [0, 0], sizes = [8, 128], strides = [1, 1]} : vector<8x512xf32> to vector<8x128xf32>
    %286 = arith.negf %285 : vector<8x128xf32>
    %287 = math.exp %286 : vector<8x128xf32>
    %cst_121 = arith.constant 1.000000e+00 : f32
    %288 = vector.broadcast %cst_121 : f32 to vector<8x128xf32>
    %289 = arith.addf %288, %287 : vector<8x128xf32>
    %290 = arith.divf %288, %289 : vector<8x128xf32>
    %291 = vector.extract_strided_slice %284 {offsets = [0, 128], sizes = [8, 128], strides = [1, 1]} : vector<8x512xf32> to vector<8x128xf32>
    %292 = arith.negf %291 : vector<8x128xf32>
    %293 = math.exp %292 : vector<8x128xf32>
    %cst_122 = arith.constant 1.000000e+00 : f32
    %294 = vector.broadcast %cst_122 : f32 to vector<8x128xf32>
    %295 = arith.addf %294, %293 : vector<8x128xf32>
    %296 = arith.divf %294, %295 : vector<8x128xf32>
    %297 = vector.extract_strided_slice %284 {offsets = [0, 256], sizes = [8, 128], strides = [1, 1]} : vector<8x512xf32> to vector<8x128xf32>
    %298 = math.tanh %297 : vector<8x128xf32>
    %299 = vector.extract_strided_slice %284 {offsets = [0, 384], sizes = [8, 128], strides = [1, 1]} : vector<8x512xf32> to vector<8x128xf32>
    %300 = arith.negf %299 : vector<8x128xf32>
    %301 = math.exp %300 : vector<8x128xf32>
    %cst_123 = arith.constant 1.000000e+00 : f32
    %302 = vector.broadcast %cst_123 : f32 to vector<8x128xf32>
    %303 = arith.addf %302, %301 : vector<8x128xf32>
    %304 = arith.divf %302, %303 : vector<8x128xf32>
    %305 = arith.mulf %296, %281 : vector<8x128xf32>
    %306 = arith.mulf %290, %298 : vector<8x128xf32>
    %307 = arith.addf %305, %306 : vector<8x128xf32>
    %308 = math.tanh %307 : vector<8x128xf32>
    %309 = arith.mulf %304, %308 : vector<8x128xf32>
    %c0_124 = arith.constant 0 : index
    %c0_125 = arith.constant 0 : index
    %310 = vector.load %arg5[%c0_124, %c0_125] : memref<8x128xf32, #tpu.memory_space<vmem>>, vector<8x128xf32>
    tpu.vector_store %arg5[%c0_124, %c0_125], %309 {strides = array<i32>} : memref<8x128xf32, #tpu.memory_space<vmem>>, vector<8x128xf32>,
    %c0_126 = arith.constant 0 : index
    %c0_127 = arith.constant 0 : index
    %311 = vector.load %arg6[%c0_126, %c0_127] : memref<8x128xf32, #tpu.memory_space<vmem>>, vector<8x128xf32>
    tpu.vector_store %arg6[%c0_126, %c0_127], %307 {strides = array<i32>} : memref<8x128xf32, #tpu.memory_space<vmem>>, vector<8x128xf32>,
    %312 = arith.index_cast %c7_i32 : i32 to index
    %c0_128 = arith.constant 0 : index
    %c0_129 = arith.constant 0 : index
    %313 = vector.load %arg4[%312, %c0_128, %c0_129] : memref<8x8x128xf32, #tpu.memory_space<vmem>>, vector<1x8x128xf32>
    %314 = vector.shape_cast %313 : vector<1x8x128xf32> to vector<8x128xf32>
    %315 = vector.shape_cast %309 : vector<8x128xf32> to vector<1x8x128xf32>
    tpu.vector_store %arg4[%312, %c0_128, %c0_129], %315 {strides = array<i32>} : memref<8x8x128xf32, #tpu.memory_space<vmem>>, vector<1x8x128xf32>,
    %c8_i32 = arith.constant 8 : i32
    return
  }
  func.func @transform_0(%arg0: i32, %arg1: i32) -> (i32, i32, i32) {
    %c0_i32 = arith.constant 0 : i32
    %c0_i32_0 = arith.constant 0 : i32
    return %arg1, %arg0, %c0_i32 : i32, i32, i32
  }
  func.func @transform_1(%arg0: i32, %arg1: i32) -> (i32, i32) {
    %c0_i32 = arith.constant 0 : i32
    %c0_i32_0 = arith.constant 0 : i32
    %c0_i32_1 = arith.constant 0 : i32
    return %c0_i32, %c0_i32_0 : i32, i32
  }
  func.func @transform_2(%arg0: i32, %arg1: i32) -> (i32, i32, i32) {
    %c0_i32 = arith.constant 0 : i32
    %c0_i32_0 = arith.constant 0 : i32
    return %arg1, %arg0, %c0_i32 : i32, i32, i32
  }
}

</mosaic_0001>

<bundles_post_ra>
// kernel: tpu_custom_call.1
= control target key start
LH: loop header
LB: loop body
LE: loop exit
PB: predicated region body
PF: predicated region fallthrough
CT: control target
= control target key end

     0   :  { %7 = vsyncpa [#allocation5], 0  ;;  %s1968_s0 = inlined_call_operand.hbm [shape: f32[8,8,512], index: 0, kind: input, shape index: {}]   ;;  %s1969_s1 = inlined_call_operand.hbm [shape: bf16[128,512], index: 1, kind: input, shape index: {}]   ;;  %s1970_s2 = inlined_call_operand.hbm [shape: f32[8,8,128], index: 2, kind: output, shape index: {}]  }
   0x1   :  { %8 = vsyncpa [#allocation8], 0 }
   0x2   :  { %9 = vsyncpa [#allocation6], 0  ;;  %s1578_s9 = smov [#allocation4]   ;;  %s1506_s13 = scalar_lea.hbm %s1968_s0, 4096 }
   0x3   :  { %s15_s10 = sshll.u32 %s1578_s9, 4  ;;  %p1507_p0 = scmp.ne.s32.totalorder %s1968_s0, %s1506_s13  ;;  %s16_s10 = int_to_ptr.vmem [resolvable:$true] %s15_s10 }
   0x4   :  { %p1510_p1 = scmp.lt.u32.totalorder %s1506_s13, %s1968_s0 }
   0x6   :  { %p1512_p2 = pnand %p1510_p1, %p1507_p0 }
   0x8   :  { %1515 = shalt.err (!%p1512_p2)
}
   0x9   :  { %s1516_s18 = scalar_lea.vmem %s16_s10, 4096  ;;  %p1521_p4 = scmp.lt.s32.totalorder %s16_s10, %s16_s10 }
   0xa   :  { %p1517_p3 = scmp.ne.s32.totalorder %s16_s10, %s1516_s18  ;;  %p1522_p5 = scmp.lt.s32.totalorder %s1516_s18, %s1516_s18 }
   0xc   :  { %p1523_p6 = por %p1522_p5, %p1521_p4 }
   0xe   :  { %p1524_p7 = pnand %p1523_p6, %p1517_p3 }
  0x10   :  { %1527 = shalt.err (!%p1524_p7)
}
  0x11   :  { %s1579_s19 = smov 512   ;;  %s1580_s20 = smov 32  }
  0x12   :  { %21 = dma.hbm_to_vmem [thread:$0]  %s1968_s0, 4096, %s16_s10, [#allocation5], %s1579_s19, %s1579_s19, %s1580_s20  }
  0x13   :  { %s1581_s23 = smov [#allocation7]   ;;  %s1528_s27 = scalar_lea.hbm %s1969_s1, 4096 }
  0x14   :  { %s27_s24 = sshll.u32 %s1581_s23, 4  ;;  %p1529_p8 = scmp.ne.s32.totalorder %s1969_s1, %s1528_s27  ;;  %s28_s24 = int_to_ptr.vmem [resolvable:$true] %s27_s24 }
  0x15   :  { %p1532_p9 = scmp.lt.u32.totalorder %s1528_s27, %s1969_s1 }
  0x17   :  { %p1534_p10 = pnand %p1532_p9, %p1529_p8 }
  0x19   :  { %1537 = shalt.err (!%p1534_p10)
}
  0x1a   :  { %s1538_s4 = scalar_lea.vmem %s28_s24, 4096  ;;  %p1543_p12 = scmp.lt.s32.totalorder %s28_s24, %s28_s24 }
  0x1b   :  { %p1539_p11 = scmp.ne.s32.totalorder %s28_s24, %s1538_s4  ;;  %p1544_p13 = scmp.lt.s32.totalorder %s1538_s4, %s1538_s4 }
  0x1d   :  { %p1545_p0 = por %p1544_p13, %p1543_p12 }
  0x1f   :  { %p1546_p1 = pnand %p1545_p0, %p1539_p11 }
  0x21   :  { %1549 = shalt.err (!%p1546_p1)
}
  0x22   :  { %s1582_s0 = smov 256   ;;  %s1583_s5 = smov 16  }
  0x23   :  { %33 = dma.hbm_to_vmem [thread:$0]  %s1969_s1, 4096, %s28_s24, [#allocation8], %s1582_s0, %s1582_s0, %s1583_s5  }
  0x24   :  { %1572 = dma.done.wait [#allocation5], 4096  }
  0x25   :  { %1573 = vsyncadd [#allocation5], 4294963200 }
  0x26   :  { %1574 = dma.done.wait [#allocation8], 4096  }
  0x27   :  { %1575 = vsyncadd [#allocation8], 4294963200  ;;  %v1584_v0 = vmov 0   ;;  %v1630_v1 = vld [vmem:[#allocation7 + $0x4] ss:$16 sps:$4 sm:$0xff]   ;;  %v1585_v33 = vmov 0.0|0.0  }
  0x28   :  { %278 = vmatprep.mubr.bf16.mxu0 %v1584_v0  ;;  %319 = vmatprep.mubr.bf16.mxu1 %v1584_v0  ;;  %v1632_v2 = vld [vmem:[#allocation7] ss:$16 sps:$4 sm:$0xff]   ;;  %v1635_v3 = vld [vmem:[#allocation7 + $0x24] ss:$16 sps:$4 sm:$0xff]   ;;  %v1643_v6 = vld [vmem:[#allocation7 + $0xc] ss:$16 sps:$4 sm:$0xff]  }
  0x29   :  { %246 = vmatprep.subr.bf16.mxu0 %v1630_v1  ;;  %v1638_v4 = vld [vmem:[#allocation7 + $0x20] ss:$16 sps:$4 sm:$0xff]   ;;  %v1641_v5 = vld [vmem:[#allocation7 + $0x44] ss:$16 sps:$4 sm:$0xff]   ;;  %v1645_v7 = vld [vmem:[#allocation7 + $0x8] ss:$16 sps:$4 sm:$0xff]   ;;  %287 = vmatprep.subr.bf16.mxu1 %v1643_v6 }
  0x2a   :  { %247 = vmatpush1.bf16.msra.mxu0 %v1632_v2  ;;  %v1648_v8 = vld [vmem:[#allocation7 + $0x40] ss:$16 sps:$4 sm:$0xff]   ;;  %v1652_v9 = vld [vmem:[#allocation7 + $0x64] ss:$16 sps:$4 sm:$0xff]   ;;  %288 = vmatpush1.bf16.msra.mxu1 %v1645_v7  ;;  %v1655_v10 = vld [vmem:[#allocation7 + $0x2c] ss:$16 sps:$4 sm:$0xff]  }
  0x2b   :  { %248 = vmatprep.subr.bf16.mxu0 %v1635_v3  ;;  %v1657_v11 = vld [vmem:[#allocation7 + $0x28] ss:$16 sps:$4 sm:$0xff]   ;;  %289 = vmatprep.subr.bf16.mxu1 %v1655_v10  ;;  %v1661_v12 = vld [vmem:[#allocation7 + $0x60] ss:$16 sps:$4 sm:$0xff]   ;;  %v1663_v13 = vld [vmem:[#allocation7 + $0x84] ss:$16 sps:$4 sm:$0xff]  }
  0x2c   :  { %v1665_v14 = vld [vmem:[#allocation7 + $0x4c] ss:$16 sps:$4 sm:$0xff]   ;;  %v1669_v15 = vld [vmem:[#allocation7 + $0x48] ss:$16 sps:$4 sm:$0xff]   ;;  %v1675_v17 = vld [vmem:[#allocation7 + $0x80] ss:$16 sps:$4 sm:$0xff]  }
  0x2d   :  { %v1672_v16 = vld [vmem:[#allocation7 + $0x6c] ss:$16 sps:$4 sm:$0xff]   ;;  %v1678_v18 = vld [vmem:[#allocation7 + $0xa4] ss:$16 sps:$4 sm:$0xff]   ;;  %v1681_v19 = vld [vmem:[#allocation7 + $0x68] ss:$16 sps:$4 sm:$0xff]  }
  0x2e   :  { %249 = vmatpush1.bf16.msra.mxu0 %v1638_v4  ;;  %290 = vmatpush1.bf16.msra.mxu1 %v1657_v11  ;;  %v1684_v20 = vld [vmem:[#allocation7 + $0x8c] ss:$16 sps:$4 sm:$0xff]   ;;  %v1687_v21 = vld [vmem:[#allocation7 + $0xa0] ss:$16 sps:$4 sm:$0xff]   ;;  %v1689_v22 = vld [vmem:[#allocation7 + $0xc4] ss:$16 sps:$4 sm:$0xff]  }
  0x2f   :  { %250 = vmatprep.subr.bf16.mxu0 %v1641_v5  ;;  %291 = vmatprep.subr.bf16.mxu1 %v1665_v14  ;;  %v1693_v23 = vld [vmem:[#allocation7 + $0x88] ss:$16 sps:$4 sm:$0xff]   ;;  %v1696_v24 = vld [vmem:[#allocation7 + $0xac] ss:$16 sps:$4 sm:$0xff]   ;;  %v1699_v25 = vld [vmem:[#allocation7 + $0xc0] ss:$16 sps:$4 sm:$0xff]  }
  0x30   :  { %v1702_v26 = vld [vmem:[#allocation7 + $0xe4] ss:$16 sps:$4 sm:$0xff]   ;;  %v1705_v27 = vld [vmem:[#allocation7 + $0xa8] ss:$16 sps:$4 sm:$0xff]   ;;  %v1708_v28 = vld [vmem:[#allocation7 + $0xcc] ss:$16 sps:$4 sm:$0xff]  }
  0x31   :  { %v1711_v29 = vld [vmem:[#allocation7 + $0xe0] ss:$16 sps:$4 sm:$0xff]   ;;  %v1715_v30 = vld [vmem:[#allocation7 + $0xc8] ss:$16 sps:$4 sm:$0xff]   ;;  %v1718_v31 = vld [vmem:[#allocation7 + $0xec] ss:$16 sps:$4 sm:$0xff]  }
  0x32   :  { %251 = vmatpush1.bf16.msra.mxu0 %v1648_v8  ;;  %292 = vmatpush1.bf16.msra.mxu1 %v1669_v15  ;;  %v1722_v32 = vld [vmem:[#allocation7 + $0xe8] ss:$16 sps:$4 sm:$0xff]   ;;  %v79_v34 = vld [vmem:[#allocation4] sm:$0xff]  ;;  %v81_v50 = vld [vmem:[#allocation4 + $0x10] sm:$0xff]  ;;  %s1586_s1 = smov [#allocation9]  }
  0x33   :  { %252 = vmatprep.subr.bf16.mxu0 %v1652_v9  ;;  %293 = vmatprep.subr.bf16.mxu1 %v1672_v16  ;;  %v80_v35 = vld [vmem:[#allocation4 + $0x8] sm:$0xff]  ;;  %v82_v44 = vld [vmem:[#allocation4 + $0x18] sm:$0xff]  ;;  %s1218_s8 = sshll.u32 %s1586_s1, 4  ;;  %s1219_s8 = int_to_ptr.vmem [resolvable:$true] %s1218_s8 }
  0x34   :  { %s1550_s9 = scalar_lea.vmem %s1219_s8, 1024  ;;  %p1555_p3 = scmp.lt.s32.totalorder %s1219_s8, %s1219_s8 }
  0x35   :  { %p1551_p2 = scmp.ne.s32.totalorder %s1219_s8, %s1550_s9  ;;  %p1556_p4 = scmp.lt.s32.totalorder %s1550_s9, %s1550_s9 }
  0x36   :  { %253 = vmatpush1.bf16.msra.mxu0 %v1661_v12  ;;  %294 = vmatpush1.bf16.msra.mxu1 %v1681_v19 }
  0x37   :  { %254 = vmatprep.subr.bf16.mxu0 %v1663_v13  ;;  %295 = vmatprep.subr.bf16.mxu1 %v1684_v20  ;;  %p1557_p5 = por %p1556_p4, %p1555_p3 }
  0x39   :  { %p1558_p6 = pnand %p1557_p5, %p1551_p2 }
  0x3a   :  { %255 = vmatpush1.bf16.msra.mxu0 %v1675_v17  ;;  %296 = vmatpush1.bf16.msra.mxu1 %v1693_v23 }
  0x3b   :  { %256 = vmatprep.subr.bf16.mxu0 %v1678_v18  ;;  %297 = vmatprep.subr.bf16.mxu1 %v1696_v24 }
  0x3e   :  { %257 = vmatpush1.bf16.msra.mxu0 %v1687_v21  ;;  %298 = vmatpush1.bf16.msra.mxu1 %v1705_v27 }
  0x3f   :  { %258 = vmatprep.subr.bf16.mxu0 %v1689_v22  ;;  %299 = vmatprep.subr.bf16.mxu1 %v1708_v28 }
  0x42   :  { %259 = vmatpush1.bf16.msra.mxu0 %v1699_v25  ;;  %300 = vmatpush1.bf16.msra.mxu1 %v1715_v30 }
  0x43   :  { %260 = vmatprep.subr.bf16.mxu0 %v1702_v26  ;;  %301 = vmatprep.subr.bf16.mxu1 %v1718_v31 }
  0x46   :  { %261 = vmatpush1.bf16.msra.mxu0 %v1711_v29  ;;  %302 = vmatpush1.bf16.msra.mxu1 %v1722_v32 }
  0x47   :  { %367 = vmatprep.subr.bf16.mxu0 %v1630_v1  ;;  %408 = vmatprep.subr.bf16.mxu1 %v1643_v6 }
  0x49   :  { %279 = vmatmul.mubr.bf16.vlgmr.msra.gmra.mrb[0].mxu0 %v1585_v33  ;;  %320 = vmatmul.mubr.bf16.vlgmr.msra.gmra.mrb[0].mxu1 %v1585_v33 }
  0x4a   :  { %368 = vmatpush1.bf16.msra.mxu0 %v1632_v2  ;;  %399 = vmatprep.mubr.bf16.mxu0 %v1584_v0 }
  0x4b   :  { %369 = vmatprep.subr.bf16.mxu0 %v1635_v3  ;;  %409 = vmatpush1.bf16.msra.mxu1 %v1645_v7 }
  0x4c   :  { %410 = vmatprep.subr.bf16.mxu1 %v1655_v10  ;;  %440 = vmatprep.mubr.bf16.mxu1 %v1584_v0 }
  0x4e   :  { %370 = vmatpush1.bf16.msra.mxu0 %v1638_v4 }
  0x4f   :  { %371 = vmatprep.subr.bf16.mxu0 %v1641_v5  ;;  %411 = vmatpush1.bf16.msra.mxu1 %v1657_v11 }
  0x50   :  { %412 = vmatprep.subr.bf16.mxu1 %v1665_v14 }
  0x52   :  { %372 = vmatpush1.bf16.msra.mxu0 %v1648_v8 }
  0x53   :  { %373 = vmatprep.subr.bf16.mxu0 %v1652_v9  ;;  %413 = vmatpush1.bf16.msra.mxu1 %v1669_v15 }
  0x54   :  { %414 = vmatprep.subr.bf16.mxu1 %v1672_v16 }
  0x56   :  { %374 = vmatpush1.bf16.msra.mxu0 %v1661_v12 }
  0x57   :  { %375 = vmatprep.subr.bf16.mxu0 %v1663_v13  ;;  %415 = vmatpush1.bf16.msra.mxu1 %v1681_v19 }
  0x58   :  { %416 = vmatprep.subr.bf16.mxu1 %v1684_v20 }
  0x5a   :  { %376 = vmatpush1.bf16.msra.mxu0 %v1675_v17 }
  0x5b   :  { %377 = vmatprep.subr.bf16.mxu0 %v1678_v18  ;;  %417 = vmatpush1.bf16.msra.mxu1 %v1693_v23 }
  0x5c   :  { %418 = vmatprep.subr.bf16.mxu1 %v1696_v24 }
  0x5e   :  { %378 = vmatpush1.bf16.msra.mxu0 %v1687_v21 }
  0x5f   :  { %379 = vmatprep.subr.bf16.mxu0 %v1689_v22  ;;  %419 = vmatpush1.bf16.msra.mxu1 %v1705_v27 }
  0x60   :  { %420 = vmatprep.subr.bf16.mxu1 %v1708_v28 }
  0x62   :  { %380 = vmatpush1.bf16.msra.mxu0 %v1699_v25 }
  0x63   :  { %381 = vmatprep.subr.bf16.mxu0 %v1702_v26  ;;  %421 = vmatpush1.bf16.msra.mxu1 %v1715_v30 }
  0x64   :  { %422 = vmatprep.subr.bf16.mxu1 %v1718_v31 }
  0x66   :  { %382 = vmatpush1.bf16.msra.mxu0 %v1711_v29 }
  0x67   :  { %489 = vmatprep.subr.bf16.mxu0 %v1630_v1  ;;  %423 = vmatpush1.bf16.msra.mxu1 %v1722_v32 }
  0x68   :  { %530 = vmatprep.subr.bf16.mxu1 %v1643_v6 }
 0x11c   :  { %v280_v36 = vpop.f32.mrb[0].mxu0  ;;  %v321_v45 = vpop.f32.mrb[0].mxu1 }
 0x11d   :  { %v328_v37 = vadd.f32 %v280_v36, %v79_v34  ;;  %v282_v38 = vpop.f32.mrb[1].mxu0  ;;  %v323_v46 = vpop.f32.mrb[1].mxu1  ;;  %v330_v52 = vadd.f32 %v321_v45, %v81_v50 }
 0x11e   :  { %v329_v39 = vadd.f32 %v282_v38, %v80_v35  ;;  %v284_v40 = vpop.f32.mrb[2].mxu0  ;;  %v331_v47 = vadd.f32 %v323_v46, %v82_v44  ;;  %v325_v48 = vpop.f32.mrb[2].mxu1  ;;  %v360_v38 = vld [vmem:[#allocation4 + $0x20] sm:$0xff] }
 0x11f   :  { %v1263_v41 = vmul.f32 -1.442695, %v328_v37  ;;  %v285_v42 = vpop.f32.mrb[3].mxu0  ;;  %v326_v49 = vpop.f32.mrb[3].mxu1 }
 0x120   :  { %v1264_v43 = vmul.f32 -1.442695, %v329_v39  ;;  %v1265_v51 = vmul.f32 -1.442695, %v331_v47  ;;  %v361_v39 = vld [vmem:[#allocation4 + $0x28] sm:$0xff] }
 0x121   :  { %1346 = vpow2.f32 %v1263_v41 }
 0x122   :  { %1348 = vpow2.f32 %v1264_v43 }
 0x123   :  { %1350 = vpow2.f32 %v1265_v51 }
 0x124   :  { %1352 = vtanh.f32 %v330_v52  ;;  %v363_v52 = vld [vmem:[#allocation4 + $0x38] sm:$0xff] }
 0x12b   :  { %v1347_v53 = vpop.eup %1346 }
 0x12c   :  { %v1349_v54 = vpop.eup %1348  ;;  %v335_v55 = vadd.f32 1.0, %v1347_v53 }
 0x12d   :  { %v341_v56 = vadd.f32 1.0, %v1349_v54  ;;  %v1351_v57 = vpop.eup %1350  ;;  %v362_v54 = vld [vmem:[#allocation4 + $0x30] sm:$0xff] }
 0x12e   :  { %1354 = vrcp.f32 %v335_v55  ;;  %v1353_v58 = vpop.eup %1352  ;;  %v348_v60 = vadd.f32 1.0, %v1351_v57 }
 0x12f   :  { %1356 = vrcp.f32 %v341_v56 }
 0x130   :  { %1358 = vrcp.f32 %v348_v60 }
 0x138   :  { %v1355_v59 = vpop.eup %1354 }
 0x139   :  { %v1357_v61 = vpop.eup %1356  ;;  %v352_v62 = vmul.f32 %v1355_v59, %v1353_v58 }
 0x13a   :  { %v351_v63 = vmul.f32 0.0, %v1357_v61  ;;  %v1359_v34 = vpop.eup %1358 }
 0x13c   :  { %v1762_v33 = vadd.f32 %v352_v62, %v351_v63 }
 0x13e   :  { %1360 = vtanh.f32 %v1762_v33 }
 0x148   :  { %v1361_v35 = vpop.eup %1360 }
 0x149   :  { %v355_v36 = vmul.f32 %v1361_v35, %v1359_v34 }
 0x14b   :  { %358 = vst [vmem:[#allocation9] sm:$0xff] %v355_v36  ;;  %v366_v37 = vpack.c.bf16 %v355_v36, %v355_v36 }
 0x14d   :  { %400 = vmatmul.mubr.bf16.vlgmr.msra.gmra.mrb[4].mxu0 %v366_v37  ;;  %441 = vmatmul.mubr.bf16.vlgmr.msra.gmra.mrb[4].mxu1 %v366_v37 }
 0x14e   :  { %490 = vmatpush1.bf16.msra.mxu0 %v1632_v2  ;;  %531 = vmatpush1.bf16.msra.mxu1 %v1645_v7 }
 0x14f   :  { %491 = vmatprep.subr.bf16.mxu0 %v1635_v3  ;;  %532 = vmatprep.subr.bf16.mxu1 %v1655_v10 }
 0x150   :  { %521 = vmatprep.mubr.bf16.mxu0 %v1584_v0  ;;  %562 = vmatprep.mubr.bf16.mxu1 %v1584_v0 }
 0x152   :  { %492 = vmatpush1.bf16.msra.mxu0 %v1638_v4  ;;  %533 = vmatpush1.bf16.msra.mxu1 %v1657_v11 }
 0x153   :  { %493 = vmatprep.subr.bf16.mxu0 %v1641_v5  ;;  %534 = vmatprep.subr.bf16.mxu1 %v1665_v14 }
 0x156   :  { %494 = vmatpush1.bf16.msra.mxu0 %v1648_v8  ;;  %535 = vmatpush1.bf16.msra.mxu1 %v1669_v15 }
 0x157   :  { %495 = vmatprep.subr.bf16.mxu0 %v1652_v9  ;;  %536 = vmatprep.subr.bf16.mxu1 %v1672_v16 }
 0x15a   :  { %496 = vmatpush1.bf16.msra.mxu0 %v1661_v12  ;;  %537 = vmatpush1.bf16.msra.mxu1 %v1681_v19 }
 0x15b   :  { %497 = vmatprep.subr.bf16.mxu0 %v1663_v13  ;;  %538 = vmatprep.subr.bf16.mxu1 %v1684_v20 }
 0x15e   :  { %498 = vmatpush1.bf16.msra.mxu0 %v1675_v17  ;;  %539 = vmatpush1.bf16.msra.mxu1 %v1693_v23 }
 0x15f   :  { %499 = vmatprep.subr.bf16.mxu0 %v1678_v18  ;;  %540 = vmatprep.subr.bf16.mxu1 %v1696_v24 }
 0x162   :  { %500 = vmatpush1.bf16.msra.mxu0 %v1687_v21  ;;  %541 = vmatpush1.bf16.msra.mxu1 %v1705_v27 }
 0x163   :  { %501 = vmatprep.subr.bf16.mxu0 %v1689_v22  ;;  %542 = vmatprep.subr.bf16.mxu1 %v1708_v28 }
 0x166   :  { %502 = vmatpush1.bf16.msra.mxu0 %v1699_v25  ;;  %543 = vmatpush1.bf16.msra.mxu1 %v1715_v30 }
 0x167   :  { %503 = vmatprep.subr.bf16.mxu0 %v1702_v26  ;;  %544 = vmatprep.subr.bf16.mxu1 %v1718_v31 }
 0x16a   :  { %504 = vmatpush1.bf16.msra.mxu0 %v1711_v29  ;;  %545 = vmatpush1.bf16.msra.mxu1 %v1722_v32 }
 0x16b   :  { %611 = vmatprep.subr.bf16.mxu0 %v1630_v1  ;;  %652 = vmatprep.subr.bf16.mxu1 %v1643_v6 }
 0x220   :  { %v401_v40 = vpop.f32.mrb[4].mxu0  ;;  %v442_v41 = vpop.f32.mrb[4].mxu1 }
 0x221   :  { %v449_v42 = vadd.f32 %v401_v40, %v360_v38  ;;  %v403_v43 = vpop.f32.mrb[5].mxu0  ;;  %v444_v44 = vpop.f32.mrb[5].mxu1  ;;  %v451_v56 = vadd.f32 %v442_v41, %v362_v54 }
 0x222   :  { %v450_v45 = vadd.f32 %v403_v43, %v361_v39  ;;  %v405_v46 = vpop.f32.mrb[6].mxu0  ;;  %v446_v47 = vpop.f32.mrb[6].mxu1  ;;  %v452_v53 = vadd.f32 %v444_v44, %v363_v52  ;;  %v483_v43 = vld [vmem:[#allocation4 + $0x48] sm:$0xff] }
 0x223   :  { %v1266_v48 = vmul.f32 -1.442695, %v449_v42  ;;  %v406_v49 = vpop.f32.mrb[7].mxu0  ;;  %v447_v50 = vpop.f32.mrb[7].mxu1 }
 0x224   :  { %v1267_v51 = vmul.f32 -1.442695, %v450_v45  ;;  %v1268_v55 = vmul.f32 -1.442695, %v452_v53 }
 0x225   :  { %1362 = vpow2.f32 %v1266_v48 }
 0x226   :  { %1364 = vpow2.f32 %v1267_v51 }
 0x227   :  { %1366 = vpow2.f32 %v1268_v55 }
 0x228   :  { %1368 = vtanh.f32 %v451_v56  ;;  %v485_v56 = vld [vmem:[#allocation4 + $0x58] sm:$0xff] }
 0x22f   :  { %v1363_v57 = vpop.eup %1362 }
 0x230   :  { %v1365_v58 = vpop.eup %1364  ;;  %v456_v59 = vadd.f32 1.0, %v1363_v57 }
 0x231   :  { %v462_v60 = vadd.f32 1.0, %v1365_v58  ;;  %v1367_v61 = vpop.eup %1366  ;;  %v484_v58 = vld [vmem:[#allocation4 + $0x50] sm:$0xff] }
 0x232   :  { %1370 = vrcp.f32 %v456_v59  ;;  %v1369_v62 = vpop.eup %1368  ;;  %v469_v36 = vadd.f32 1.0, %v1367_v61 }
 0x233   :  { %1372 = vrcp.f32 %v462_v60 }
 0x234   :  { %1374 = vrcp.f32 %v469_v36 }
 0x23c   :  { %v1371_v63 = vpop.eup %1370 }
 0x23d   :  { %v1373_v34 = vpop.eup %1372  ;;  %v473_v35 = vmul.f32 %v1371_v63, %v1369_v62 }
 0x23e   :  { %v472_v37 = vmul.f32 %v1373_v34, %v1762_v33  ;;  %v1375_v39 = vpop.eup %1374  ;;  %v482_v33 = vld [vmem:[#allocation4 + $0x40] sm:$0xff] }
 0x240   :  { %v1800_v38 = vadd.f32 %v473_v35, %v472_v37 }
 0x242   :  { %1376 = vtanh.f32 %v1800_v38 }
 0x24c   :  { %v1377_v40 = vpop.eup %1376 }
 0x24d   :  { %v476_v41 = vmul.f32 %v1377_v40, %v1375_v39 }
 0x24f   :  { %480 = vst [vmem:[#allocation9 + $0x8] sm:$0xff] %v476_v41  ;;  %v488_v42 = vpack.c.bf16 %v476_v41, %v476_v41 }
 0x251   :  { %522 = vmatmul.mubr.bf16.vlgmr.msra.gmra.mrb[8].mxu0 %v488_v42  ;;  %563 = vmatmul.mubr.bf16.vlgmr.msra.gmra.mrb[8].mxu1 %v488_v42 }
 0x252   :  { %612 = vmatpush1.bf16.msra.mxu0 %v1632_v2  ;;  %653 = vmatpush1.bf16.msra.mxu1 %v1645_v7 }
 0x253   :  { %613 = vmatprep.subr.bf16.mxu0 %v1635_v3  ;;  %654 = vmatprep.subr.bf16.mxu1 %v1655_v10 }
 0x254   :  { %643 = vmatprep.mubr.bf16.mxu0 %v1584_v0  ;;  %684 = vmatprep.mubr.bf16.mxu1 %v1584_v0 }
 0x256   :  { %614 = vmatpush1.bf16.msra.mxu0 %v1638_v4  ;;  %655 = vmatpush1.bf16.msra.mxu1 %v1657_v11 }
 0x257   :  { %615 = vmatprep.subr.bf16.mxu0 %v1641_v5  ;;  %656 = vmatprep.subr.bf16.mxu1 %v1665_v14 }
 0x25a   :  { %616 = vmatpush1.bf16.msra.mxu0 %v1648_v8  ;;  %657 = vmatpush1.bf16.msra.mxu1 %v1669_v15 }
 0x25b   :  { %617 = vmatprep.subr.bf16.mxu0 %v1652_v9  ;;  %658 = vmatprep.subr.bf16.mxu1 %v1672_v16 }
 0x25e   :  { %618 = vmatpush1.bf16.msra.mxu0 %v1661_v12  ;;  %659 = vmatpush1.bf16.msra.mxu1 %v1681_v19 }
 0x25f   :  { %619 = vmatprep.subr.bf16.mxu0 %v1663_v13  ;;  %660 = vmatprep.subr.bf16.mxu1 %v1684_v20 }
 0x262   :  { %620 = vmatpush1.bf16.msra.mxu0 %v1675_v17  ;;  %661 = vmatpush1.bf16.msra.mxu1 %v1693_v23 }
 0x263   :  { %621 = vmatprep.subr.bf16.mxu0 %v1678_v18  ;;  %662 = vmatprep.subr.bf16.mxu1 %v1696_v24 }
 0x266   :  { %622 = vmatpush1.bf16.msra.mxu0 %v1687_v21  ;;  %663 = vmatpush1.bf16.msra.mxu1 %v1705_v27 }
 0x267   :  { %623 = vmatprep.subr.bf16.mxu0 %v1689_v22  ;;  %664 = vmatprep.subr.bf16.mxu1 %v1708_v28 }
 0x26a   :  { %624 = vmatpush1.bf16.msra.mxu0 %v1699_v25  ;;  %665 = vmatpush1.bf16.msra.mxu1 %v1715_v30 }
 0x26b   :  { %625 = vmatprep.subr.bf16.mxu0 %v1702_v26  ;;  %666 = vmatprep.subr.bf16.mxu1 %v1718_v31 }
 0x26e   :  { %626 = vmatpush1.bf16.msra.mxu0 %v1711_v29  ;;  %667 = vmatpush1.bf16.msra.mxu1 %v1722_v32 }
 0x26f   :  { %733 = vmatprep.subr.bf16.mxu0 %v1630_v1  ;;  %774 = vmatprep.subr.bf16.mxu1 %v1643_v6 }
 0x324   :  { %v523_v44 = vpop.f32.mrb[8].mxu0  ;;  %v564_v45 = vpop.f32.mrb[8].mxu1 }
 0x325   :  { %v571_v46 = vadd.f32 %v523_v44, %v482_v33  ;;  %v525_v47 = vpop.f32.mrb[9].mxu0  ;;  %v566_v48 = vpop.f32.mrb[9].mxu1  ;;  %v573_v60 = vadd.f32 %v564_v45, %v484_v58 }
 0x326   :  { %v572_v49 = vadd.f32 %v525_v47, %v483_v43  ;;  %v527_v50 = vpop.f32.mrb[10].mxu0  ;;  %v568_v51 = vpop.f32.mrb[10].mxu1  ;;  %v574_v57 = vadd.f32 %v566_v48, %v485_v56  ;;  %v605_v47 = vld [vmem:[#allocation4 + $0x68] sm:$0xff] }
 0x327   :  { %v1269_v52 = vmul.f32 -1.442695, %v571_v46  ;;  %v528_v53 = vpop.f32.mrb[11].mxu0  ;;  %v569_v54 = vpop.f32.mrb[11].mxu1 }
 0x328   :  { %v1270_v55 = vmul.f32 -1.442695, %v572_v49  ;;  %v1271_v59 = vmul.f32 -1.442695, %v574_v57 }
 0x329   :  { %1378 = vpow2.f32 %v1269_v52 }
 0x32a   :  { %1380 = vpow2.f32 %v1270_v55 }
 0x32b   :  { %1382 = vpow2.f32 %v1271_v59 }
 0x32c   :  { %1384 = vtanh.f32 %v573_v60  ;;  %v607_v60 = vld [vmem:[#allocation4 + $0x78] sm:$0xff] }
 0x333   :  { %v1379_v61 = vpop.eup %1378 }
 0x334   :  { %v1381_v62 = vpop.eup %1380  ;;  %v578_v63 = vadd.f32 1.0, %v1379_v61 }
 0x335   :  { %v584_v34 = vadd.f32 1.0, %v1381_v62  ;;  %v1383_v35 = vpop.eup %1382  ;;  %v606_v62 = vld [vmem:[#allocation4 + $0x70] sm:$0xff] }
 0x336   :  { %1386 = vrcp.f32 %v578_v63  ;;  %v1385_v36 = vpop.eup %1384  ;;  %v591_v41 = vadd.f32 1.0, %v1383_v35 }
 0x337   :  { %1388 = vrcp.f32 %v584_v34 }
 0x338   :  { %1390 = vrcp.f32 %v591_v41 }
 0x340   :  { %v1387_v37 = vpop.eup %1386 }
 0x341   :  { %v1389_v39 = vpop.eup %1388  ;;  %v595_v40 = vmul.f32 %v1387_v37, %v1385_v36 }
 0x342   :  { %v594_v42 = vmul.f32 %v1389_v39, %v1800_v38  ;;  %v1391_v43 = vpop.eup %1390  ;;  %v604_v38 = vld [vmem:[#allocation4 + $0x60] sm:$0xff] }
 0x344   :  { %v1838_v33 = vadd.f32 %v595_v40, %v594_v42 }
 0x346   :  { %1392 = vtanh.f32 %v1838_v33 }
 0x350   :  { %v1393_v44 = vpop.eup %1392 }
 0x351   :  { %v598_v45 = vmul.f32 %v1393_v44, %v1391_v43 }
 0x353   :  { %602 = vst [vmem:[#allocation9 + $0x10] sm:$0xff] %v598_v45  ;;  %v610_v46 = vpack.c.bf16 %v598_v45, %v598_v45 }
 0x355   :  { %644 = vmatmul.mubr.bf16.vlgmr.msra.gmra.mrb[12].mxu0 %v610_v46  ;;  %685 = vmatmul.mubr.bf16.vlgmr.msra.gmra.mrb[12].mxu1 %v610_v46 }
 0x356   :  { %734 = vmatpush1.bf16.msra.mxu0 %v1632_v2  ;;  %775 = vmatpush1.bf16.msra.mxu1 %v1645_v7 }
 0x357   :  { %735 = vmatprep.subr.bf16.mxu0 %v1635_v3  ;;  %776 = vmatprep.subr.bf16.mxu1 %v1655_v10 }
 0x358   :  { %765 = vmatprep.mubr.bf16.mxu0 %v1584_v0  ;;  %806 = vmatprep.mubr.bf16.mxu1 %v1584_v0 }
 0x35a   :  { %736 = vmatpush1.bf16.msra.mxu0 %v1638_v4  ;;  %777 = vmatpush1.bf16.msra.mxu1 %v1657_v11 }
 0x35b   :  { %737 = vmatprep.subr.bf16.mxu0 %v1641_v5  ;;  %778 = vmatprep.subr.bf16.mxu1 %v1665_v14 }
 0x35e   :  { %738 = vmatpush1.bf16.msra.mxu0 %v1648_v8  ;;  %779 = vmatpush1.bf16.msra.mxu1 %v1669_v15 }
 0x35f   :  { %739 = vmatprep.subr.bf16.mxu0 %v1652_v9  ;;  %780 = vmatprep.subr.bf16.mxu1 %v1672_v16 }
 0x362   :  { %740 = vmatpush1.bf16.msra.mxu0 %v1661_v12  ;;  %781 = vmatpush1.bf16.msra.mxu1 %v1681_v19 }
 0x363   :  { %741 = vmatprep.subr.bf16.mxu0 %v1663_v13  ;;  %782 = vmatprep.subr.bf16.mxu1 %v1684_v20 }
 0x366   :  { %742 = vmatpush1.bf16.msra.mxu0 %v1675_v17  ;;  %783 = vmatpush1.bf16.msra.mxu1 %v1693_v23 }
 0x367   :  { %743 = vmatprep.subr.bf16.mxu0 %v1678_v18  ;;  %784 = vmatprep.subr.bf16.mxu1 %v1696_v24 }
 0x36a   :  { %744 = vmatpush1.bf16.msra.mxu0 %v1687_v21  ;;  %785 = vmatpush1.bf16.msra.mxu1 %v1705_v27 }
 0x36b   :  { %745 = vmatprep.subr.bf16.mxu0 %v1689_v22  ;;  %786 = vmatprep.subr.bf16.mxu1 %v1708_v28 }
 0x36e   :  { %746 = vmatpush1.bf16.msra.mxu0 %v1699_v25  ;;  %787 = vmatpush1.bf16.msra.mxu1 %v1715_v30 }
 0x36f   :  { %747 = vmatprep.subr.bf16.mxu0 %v1702_v26  ;;  %788 = vmatprep.subr.bf16.mxu1 %v1718_v31 }
 0x372   :  { %748 = vmatpush1.bf16.msra.mxu0 %v1711_v29  ;;  %789 = vmatpush1.bf16.msra.mxu1 %v1722_v32 }
 0x373   :  { %855 = vmatprep.subr.bf16.mxu0 %v1630_v1  ;;  %896 = vmatprep.subr.bf16.mxu1 %v1643_v6 }
 0x428   :  { %v645_v48 = vpop.f32.mrb[12].mxu0  ;;  %v686_v49 = vpop.f32.mrb[12].mxu1 }
 0x429   :  { %v693_v50 = vadd.f32 %v645_v48, %v604_v38  ;;  %v647_v51 = vpop.f32.mrb[13].mxu0  ;;  %v688_v52 = vpop.f32.mrb[13].mxu1  ;;  %v695_v34 = vadd.f32 %v686_v49, %v606_v62 }
 0x42a   :  { %v694_v53 = vadd.f32 %v647_v51, %v605_v47  ;;  %v649_v54 = vpop.f32.mrb[14].mxu0  ;;  %v690_v55 = vpop.f32.mrb[14].mxu1  ;;  %v696_v61 = vadd.f32 %v688_v52, %v607_v60  ;;  %v727_v51 = vld [vmem:[#allocation4 + $0x88] sm:$0xff] }
 0x42b   :  { %v1272_v56 = vmul.f32 -1.442695, %v693_v50  ;;  %v650_v57 = vpop.f32.mrb[15].mxu0  ;;  %v691_v58 = vpop.f32.mrb[15].mxu1 }
 0x42c   :  { %v1273_v59 = vmul.f32 -1.442695, %v694_v53  ;;  %v1274_v63 = vmul.f32 -1.442695, %v696_v61 }
 0x42d   :  { %1394 = vpow2.f32 %v1272_v56 }
 0x42e   :  { %1396 = vpow2.f32 %v1273_v59 }
 0x42f   :  { %1398 = vpow2.f32 %v1274_v63 }
 0x430   :  { %1400 = vtanh.f32 %v695_v34  ;;  %v729_v34 = vld [vmem:[#allocation4 + $0x98] sm:$0xff] }
 0x437   :  { %v1395_v35 = vpop.eup %1394 }
 0x438   :  { %v1397_v36 = vpop.eup %1396  ;;  %v700_v37 = vadd.f32 1.0, %v1395_v35  ;;  %v728_v35 = vld [vmem:[#allocation4 + $0x90] sm:$0xff] }
 0x439   :  { %v706_v39 = vadd.f32 1.0, %v1397_v36  ;;  %v1399_v40 = vpop.eup %1398 }
 0x43a   :  { %1402 = vrcp.f32 %v700_v37  ;;  %v1401_v41 = vpop.eup %1400  ;;  %v713_v45 = vadd.f32 1.0, %v1399_v40 }
 0x43b   :  { %1404 = vrcp.f32 %v706_v39 }
 0x43c   :  { %1406 = vrcp.f32 %v713_v45 }
 0x444   :  { %v1403_v42 = vpop.eup %1402 }
 0x445   :  { %v1405_v43 = vpop.eup %1404  ;;  %v717_v44 = vmul.f32 %v1403_v42, %v1401_v41 }
 0x446   :  { %v716_v46 = vmul.f32 %v1405_v43, %v1838_v33  ;;  %v1407_v47 = vpop.eup %1406  ;;  %v726_v33 = vld [vmem:[#allocation4 + $0x80] sm:$0xff] }
 0x448   :  { %v1876_v38 = vadd.f32 %v717_v44, %v716_v46 }
 0x44a   :  { %1408 = vtanh.f32 %v1876_v38 }
 0x454   :  { %v1409_v48 = vpop.eup %1408 }
 0x455   :  { %v720_v49 = vmul.f32 %v1409_v48, %v1407_v47 }
 0x457   :  { %724 = vst [vmem:[#allocation9 + $0x18] sm:$0xff] %v720_v49  ;;  %v732_v50 = vpack.c.bf16 %v720_v49, %v720_v49 }
 0x459   :  { %766 = vmatmul.mubr.bf16.vlgmr.msra.gmra.mrb[16].mxu0 %v732_v50  ;;  %807 = vmatmul.mubr.bf16.vlgmr.msra.gmra.mrb[16].mxu1 %v732_v50 }
 0x45a   :  { %856 = vmatpush1.bf16.msra.mxu0 %v1632_v2  ;;  %897 = vmatpush1.bf16.msra.mxu1 %v1645_v7 }
 0x45b   :  { %857 = vmatprep.subr.bf16.mxu0 %v1635_v3  ;;  %898 = vmatprep.subr.bf16.mxu1 %v1655_v10 }
 0x45c   :  { %887 = vmatprep.mubr.bf16.mxu0 %v1584_v0  ;;  %928 = vmatprep.mubr.bf16.mxu1 %v1584_v0 }
 0x45e   :  { %858 = vmatpush1.bf16.msra.mxu0 %v1638_v4  ;;  %899 = vmatpush1.bf16.msra.mxu1 %v1657_v11 }
 0x45f   :  { %859 = vmatprep.subr.bf16.mxu0 %v1641_v5  ;;  %900 = vmatprep.subr.bf16.mxu1 %v1665_v14 }
 0x462   :  { %860 = vmatpush1.bf16.msra.mxu0 %v1648_v8  ;;  %901 = vmatpush1.bf16.msra.mxu1 %v1669_v15 }
 0x463   :  { %861 = vmatprep.subr.bf16.mxu0 %v1652_v9  ;;  %902 = vmatprep.subr.bf16.mxu1 %v1672_v16 }
 0x466   :  { %862 = vmatpush1.bf16.msra.mxu0 %v1661_v12  ;;  %903 = vmatpush1.bf16.msra.mxu1 %v1681_v19 }
 0x467   :  { %863 = vmatprep.subr.bf16.mxu0 %v1663_v13  ;;  %904 = vmatprep.subr.bf16.mxu1 %v1684_v20 }
 0x46a   :  { %864 = vmatpush1.bf16.msra.mxu0 %v1675_v17  ;;  %905 = vmatpush1.bf16.msra.mxu1 %v1693_v23 }
 0x46b   :  { %865 = vmatprep.subr.bf16.mxu0 %v1678_v18  ;;  %906 = vmatprep.subr.bf16.mxu1 %v1696_v24 }
 0x46e   :  { %866 = vmatpush1.bf16.msra.mxu0 %v1687_v21  ;;  %907 = vmatpush1.bf16.msra.mxu1 %v1705_v27 }
 0x46f   :  { %867 = vmatprep.subr.bf16.mxu0 %v1689_v22  ;;  %908 = vmatprep.subr.bf16.mxu1 %v1708_v28 }
 0x472   :  { %868 = vmatpush1.bf16.msra.mxu0 %v1699_v25  ;;  %909 = vmatpush1.bf16.msra.mxu1 %v1715_v30 }
 0x473   :  { %869 = vmatprep.subr.bf16.mxu0 %v1702_v26  ;;  %910 = vmatprep.subr.bf16.mxu1 %v1718_v31 }
 0x476   :  { %870 = vmatpush1.bf16.msra.mxu0 %v1711_v29  ;;  %911 = vmatpush1.bf16.msra.mxu1 %v1722_v32 }
 0x477   :  { %977 = vmatprep.subr.bf16.mxu0 %v1630_v1  ;;  %1018 = vmatprep.subr.bf16.mxu1 %v1643_v6 }
 0x52c   :  { %v767_v52 = vpop.f32.mrb[16].mxu0  ;;  %v808_v53 = vpop.f32.mrb[16].mxu1 }
 0x52d   :  { %v815_v54 = vadd.f32 %v767_v52, %v726_v33  ;;  %v769_v55 = vpop.f32.mrb[17].mxu0  ;;  %v810_v56 = vpop.f32.mrb[17].mxu1  ;;  %v817_v36 = vadd.f32 %v808_v53, %v728_v35  ;;  %v1483_v35 = vld [vmem:[#allocation7 + $0x4c] ss:$16 sps:$4 sm:$0xff]  }
 0x52e   :  { %v816_v57 = vadd.f32 %v769_v55, %v727_v51  ;;  %v771_v58 = vpop.f32.mrb[18].mxu0  ;;  %v812_v59 = vpop.f32.mrb[18].mxu1  ;;  %v818_v1 = vadd.f32 %v810_v56, %v729_v34  ;;  %v1481_v34 = vld [vmem:[#allocation7 + $0x28] ss:$16 sps:$4 sm:$0xff]  }
 0x52f   :  { %v1275_v60 = vmul.f32 -1.442695, %v815_v54  ;;  %v772_v61 = vpop.f32.mrb[19].mxu0  ;;  %v813_v62 = vpop.f32.mrb[19].mxu1  ;;  %v1476_v59 = vld [vmem:[#allocation7] ss:$16 sps:$4 sm:$0xff]  }
 0x530   :  { %v1276_v63 = vmul.f32 -1.442695, %v816_v57  ;;  %v1277_v6 = vmul.f32 -1.442695, %v818_v1  ;;  %v1478_v61 = vld [vmem:[#allocation7 + $0x24] ss:$16 sps:$4 sm:$0xff]  }
 0x531   :  { %1410 = vpow2.f32 %v1275_v60  ;;  %v1477_v60 = vld [vmem:[#allocation7 + $0x8] ss:$16 sps:$4 sm:$0xff]   ;;  %v1479_v62 = vld [vmem:[#allocation7 + $0x2c] ss:$16 sps:$4 sm:$0xff]   ;;  %v1482_v1 = vld [vmem:[#allocation7 + $0x44] ss:$16 sps:$4 sm:$0xff]  }
 0x532   :  { %1412 = vpow2.f32 %v1276_v63  ;;  %v1480_v63 = vld [vmem:[#allocation7 + $0x20] ss:$16 sps:$4 sm:$0xff]  }
 0x533   :  { %1414 = vpow2.f32 %v1277_v6  ;;  %v1484_v6 = vld [vmem:[#allocation7 + $0x40] ss:$16 sps:$4 sm:$0xff]  }
 0x534   :  { %1416 = vtanh.f32 %v817_v36  ;;  %v1485_v36 = vld [vmem:[#allocation7 + $0x48] ss:$16 sps:$4 sm:$0xff]  }
 0x53b   :  { %v1411_v37 = vpop.eup %1410 }
 0x53c   :  { %v1413_v39 = vpop.eup %1412  ;;  %v822_v40 = vadd.f32 1.0, %v1411_v37  ;;  %v1486_v37 = vld [vmem:[#allocation7 + $0x64] ss:$16 sps:$4 sm:$0xff]  }
 0x53d   :  { %v828_v41 = vadd.f32 1.0, %v1413_v39  ;;  %v1415_v42 = vpop.eup %1414  ;;  %v1487_v39 = vld [vmem:[#allocation7 + $0x6c] ss:$16 sps:$4 sm:$0xff]  }
 0x53e   :  { %1418 = vrcp.f32 %v822_v40  ;;  %v1417_v43 = vpop.eup %1416  ;;  %v835_v47 = vadd.f32 1.0, %v1415_v42  ;;  %v1488_v40 = vld [vmem:[#allocation7 + $0x60] ss:$16 sps:$4 sm:$0xff]   ;;  %v1491_v42 = vld [vmem:[#allocation7 + $0x8c] ss:$16 sps:$4 sm:$0xff]  }
 0x53f   :  { %1420 = vrcp.f32 %v828_v41  ;;  %v1489_v41 = vld [vmem:[#allocation7 + $0x68] ss:$16 sps:$4 sm:$0xff]  }
 0x540   :  { %1422 = vrcp.f32 %v835_v47  ;;  %v1496_v47 = vld [vmem:[#allocation7 + $0xa0] ss:$16 sps:$4 sm:$0xff]  }
 0x548   :  { %v1419_v44 = vpop.eup %1418 }
 0x549   :  { %v1421_v45 = vpop.eup %1420  ;;  %v839_v46 = vmul.f32 %v1419_v44, %v1417_v43  ;;  %v1492_v43 = vld [vmem:[#allocation7 + $0x80] ss:$16 sps:$4 sm:$0xff]   ;;  %v1493_v44 = vld [vmem:[#allocation7 + $0x88] ss:$16 sps:$4 sm:$0xff]  }
 0x54a   :  { %v838_v48 = vmul.f32 %v1421_v45, %v1876_v38  ;;  %v1423_v50 = vpop.eup %1422  ;;  %v1494_v45 = vld [vmem:[#allocation7 + $0xa4] ss:$16 sps:$4 sm:$0xff]  }
 0x54c   :  { %v1914_v49 = vadd.f32 %v839_v46, %v838_v48  ;;  %v1495_v46 = vld [vmem:[#allocation7 + $0xac] ss:$16 sps:$4 sm:$0xff]   ;;  %v1497_v48 = vld [vmem:[#allocation7 + $0xa8] ss:$16 sps:$4 sm:$0xff]  }
 0x54e   :  { %1424 = vtanh.f32 %v1914_v49 }
 0x558   :  { %v1425_v33 = vpop.eup %1424 }
 0x559   :  { %v842_v51 = vmul.f32 %v1425_v33, %v1423_v50  ;;  %v1499_v50 = vld [vmem:[#allocation7 + $0xcc] ss:$16 sps:$4 sm:$0xff]   ;;  %v1500_v33 = vld [vmem:[#allocation7 + $0xc0] ss:$16 sps:$4 sm:$0xff]  }
 0x55b   :  { %846 = vst [vmem:[#allocation9 + $0x20] sm:$0xff] %v842_v51  ;;  %v854_v52 = vpack.c.bf16 %v842_v51, %v842_v51  ;;  %v1501_v51 = vld [vmem:[#allocation7 + $0xc8] ss:$16 sps:$4 sm:$0xff]  }
 0x55d   :  { %888 = vmatmul.mubr.bf16.vlgmr.msra.gmra.mrb[20].mxu0 %v854_v52  ;;  %929 = vmatmul.mubr.bf16.vlgmr.msra.gmra.mrb[20].mxu1 %v854_v52  ;;  %v1502_v52 = vld [vmem:[#allocation7 + $0xe4] ss:$16 sps:$4 sm:$0xff]  }
 0x55e   :  { %978 = vmatpush1.bf16.msra.mxu0 %v1632_v2  ;;  %1019 = vmatpush1.bf16.msra.mxu1 %v1645_v7  ;;  %v1474_v2 = vld [vmem:[#allocation7 + $0x4] ss:$16 sps:$4 sm:$0xff]  }
 0x55f   :  { %979 = vmatprep.subr.bf16.mxu0 %v1635_v3  ;;  %1020 = vmatprep.subr.bf16.mxu1 %v1655_v10  ;;  %v1475_v3 = vld [vmem:[#allocation7 + $0xc] ss:$16 sps:$4 sm:$0xff]  }
 0x560   :  { %1009 = vmatprep.mubr.bf16.mxu0 %v1584_v0  ;;  %1050 = vmatprep.mubr.bf16.mxu1 %v1584_v0 }
 0x562   :  { %980 = vmatpush1.bf16.msra.mxu0 %v1638_v4  ;;  %1021 = vmatpush1.bf16.msra.mxu1 %v1657_v11  ;;  %v848_v4 = vld [vmem:[#allocation4 + $0xa0] sm:$0xff] }
 0x563   :  { %981 = vmatprep.subr.bf16.mxu0 %v1641_v5  ;;  %1022 = vmatprep.subr.bf16.mxu1 %v1665_v14  ;;  %v849_v5 = vld [vmem:[#allocation4 + $0xa8] sm:$0xff] }
 0x566   :  { %982 = vmatpush1.bf16.msra.mxu0 %v1648_v8  ;;  %1023 = vmatpush1.bf16.msra.mxu1 %v1669_v15 }
 0x567   :  { %983 = vmatprep.subr.bf16.mxu0 %v1652_v9  ;;  %1024 = vmatprep.subr.bf16.mxu1 %v1672_v16 }
 0x56a   :  { %984 = vmatpush1.bf16.msra.mxu0 %v1661_v12  ;;  %1025 = vmatpush1.bf16.msra.mxu1 %v1681_v19  ;;  %v851_v19 = vld [vmem:[#allocation4 + $0xb8] sm:$0xff] }
 0x56b   :  { %985 = vmatprep.subr.bf16.mxu0 %v1663_v13  ;;  %1026 = vmatprep.subr.bf16.mxu1 %v1684_v20 }
 0x56e   :  { %986 = vmatpush1.bf16.msra.mxu0 %v1675_v17  ;;  %1027 = vmatpush1.bf16.msra.mxu1 %v1693_v23 }
 0x56f   :  { %987 = vmatprep.subr.bf16.mxu0 %v1678_v18  ;;  %1028 = vmatprep.subr.bf16.mxu1 %v1696_v24 }
 0x572   :  { %988 = vmatpush1.bf16.msra.mxu0 %v1687_v21  ;;  %1029 = vmatpush1.bf16.msra.mxu1 %v1705_v27  ;;  %v850_v21 = vld [vmem:[#allocation4 + $0xb0] sm:$0xff] }
 0x573   :  { %989 = vmatprep.subr.bf16.mxu0 %v1689_v22  ;;  %1030 = vmatprep.subr.bf16.mxu1 %v1708_v28 }
 0x576   :  { %990 = vmatpush1.bf16.msra.mxu0 %v1699_v25  ;;  %1031 = vmatpush1.bf16.msra.mxu1 %v1715_v30 }
 0x577   :  { %991 = vmatprep.subr.bf16.mxu0 %v1702_v26  ;;  %1032 = vmatprep.subr.bf16.mxu1 %v1718_v31 }
 0x57a   :  { %992 = vmatpush1.bf16.msra.mxu0 %v1711_v29  ;;  %1033 = vmatpush1.bf16.msra.mxu1 %v1722_v32 }
 0x57b   :  { %1099 = vmatprep.subr.bf16.mxu0 %v1474_v2  ;;  %1140 = vmatprep.subr.bf16.mxu1 %v1475_v3  ;;  %v1503_v2 = vld [vmem:[#allocation7 + $0xec] ss:$16 sps:$4 sm:$0xff]   ;;  %v1504_v3 = vld [vmem:[#allocation7 + $0xe0] ss:$16 sps:$4 sm:$0xff]  }
 0x630   :  { %v889_v7 = vpop.f32.mrb[20].mxu0  ;;  %v930_v8 = vpop.f32.mrb[20].mxu1 }
 0x631   :  { %v937_v9 = vadd.f32 %v889_v7, %v848_v4  ;;  %v891_v10 = vpop.f32.mrb[21].mxu0  ;;  %v932_v11 = vpop.f32.mrb[21].mxu1  ;;  %v939_v23 = vadd.f32 %v930_v8, %v850_v21  ;;  %v1505_v4 = vld [vmem:[#allocation7 + $0xe8] ss:$16 sps:$4 sm:$0xff]  }
 0x632   :  { %v938_v12 = vadd.f32 %v891_v10, %v849_v5  ;;  %v893_v13 = vpop.f32.mrb[22].mxu0  ;;  %v934_v14 = vpop.f32.mrb[22].mxu1  ;;  %v940_v20 = vadd.f32 %v932_v11, %v851_v19  ;;  %v970_v5 = vld [vmem:[#allocation4 + $0xc0] sm:$0xff]  ;;  %v971_v7 = vld [vmem:[#allocation4 + $0xc8] sm:$0xff] }
 0x633   :  { %v1278_v15 = vmul.f32 -1.442695, %v937_v9  ;;  %v894_v16 = vpop.f32.mrb[23].mxu0  ;;  %v935_v17 = vpop.f32.mrb[23].mxu1 }
 0x634   :  { %v1279_v18 = vmul.f32 -1.442695, %v938_v12  ;;  %v1280_v22 = vmul.f32 -1.442695, %v940_v20  ;;  %v973_v20 = vld [vmem:[#allocation4 + $0xd8] sm:$0xff] }
 0x635   :  { %1426 = vpow2.f32 %v1278_v15 }
 0x636   :  { %1428 = vpow2.f32 %v1279_v18 }
 0x637   :  { %1430 = vpow2.f32 %v1280_v22  ;;  %v972_v22 = vld [vmem:[#allocation4 + $0xd0] sm:$0xff] }
 0x638   :  { %1432 = vtanh.f32 %v939_v23 }
 0x63f   :  { %v1427_v24 = vpop.eup %1426 }
 0x640   :  { %v1429_v25 = vpop.eup %1428  ;;  %v944_v26 = vadd.f32 1.0, %v1427_v24 }
 0x641   :  { %v950_v27 = vadd.f32 1.0, %v1429_v25  ;;  %v1431_v28 = vpop.eup %1430 }
 0x642   :  { %1434 = vrcp.f32 %v944_v26  ;;  %v1433_v29 = vpop.eup %1432  ;;  %v957_v38 = vadd.f32 1.0, %v1431_v28 }
 0x643   :  { %1436 = vrcp.f32 %v950_v27 }
 0x644   :  { %1438 = vrcp.f32 %v957_v38 }
 0x64c   :  { %v1435_v30 = vpop.eup %1434 }
 0x64d   :  { %v1437_v31 = vpop.eup %1436  ;;  %v961_v32 = vmul.f32 %v1435_v30, %v1433_v29 }
 0x64e   :  { %v960_v53 = vmul.f32 %v1437_v31, %v1914_v49  ;;  %v1439_v55 = vpop.eup %1438  ;;  %v1498_v49 = vld [vmem:[#allocation7 + $0xc4] ss:$16 sps:$4 sm:$0xff]  }
 0x650   :  { %v1950_v54 = vadd.f32 %v961_v32, %v960_v53 }
 0x652   :  { %1440 = vtanh.f32 %v1950_v54 }
 0x65c   :  { %v1441_v56 = vpop.eup %1440 }
 0x65d   :  { %v964_v57 = vmul.f32 %v1441_v56, %v1439_v55 }
 0x65f   :  { %968 = vst [vmem:[#allocation9 + $0x28] sm:$0xff] %v964_v57  ;;  %v976_v58 = vpack.c.bf16 %v964_v57, %v964_v57 }
 0x661   :  { %1010 = vmatmul.mubr.bf16.vlgmr.msra.gmra.mrb[24].mxu0 %v976_v58  ;;  %1051 = vmatmul.mubr.bf16.vlgmr.msra.gmra.mrb[24].mxu1 %v976_v58 }
 0x662   :  { %1100 = vmatpush1.bf16.msra.mxu0 %v1476_v59  ;;  %1141 = vmatpush1.bf16.msra.mxu1 %v1477_v60 }
 0x663   :  { %1101 = vmatprep.subr.bf16.mxu0 %v1478_v61  ;;  %1142 = vmatprep.subr.bf16.mxu1 %v1479_v62  ;;  %v1092_v61 = vld [vmem:[#allocation4 + $0xe0] sm:$0xff]  ;;  %v1093_v62 = vld [vmem:[#allocation4 + $0xe8] sm:$0xff] }
 0x664   :  { %1131 = vmatprep.mubr.bf16.mxu0 %v1584_v0  ;;  %1172 = vmatprep.mubr.bf16.mxu1 %v1584_v0  ;;  %v1490_v0 = vld [vmem:[#allocation7 + $0x84] ss:$16 sps:$4 sm:$0xff]  }
 0x666   :  { %1102 = vmatpush1.bf16.msra.mxu0 %v1480_v63  ;;  %1143 = vmatpush1.bf16.msra.mxu1 %v1481_v34 }
 0x667   :  { %1103 = vmatprep.subr.bf16.mxu0 %v1482_v1  ;;  %1144 = vmatprep.subr.bf16.mxu1 %v1483_v35 }
 0x66a   :  { %1104 = vmatpush1.bf16.msra.mxu0 %v1484_v6  ;;  %1145 = vmatpush1.bf16.msra.mxu1 %v1485_v36 }
 0x66b   :  { %1105 = vmatprep.subr.bf16.mxu0 %v1486_v37  ;;  %1146 = vmatprep.subr.bf16.mxu1 %v1487_v39 }
 0x66e   :  { %1106 = vmatpush1.bf16.msra.mxu0 %v1488_v40  ;;  %1147 = vmatpush1.bf16.msra.mxu1 %v1489_v41 }
 0x66f   :  { %1107 = vmatprep.subr.bf16.mxu0 %v1490_v0  ;;  %1148 = vmatprep.subr.bf16.mxu1 %v1491_v42  ;;  %v1095_v42 = vld [vmem:[#allocation4 + $0xf8] sm:$0xff] }
 0x672   :  { %1108 = vmatpush1.bf16.msra.mxu0 %v1492_v43  ;;  %1149 = vmatpush1.bf16.msra.mxu1 %v1493_v44  ;;  %v1094_v44 = vld [vmem:[#allocation4 + $0xf0] sm:$0xff] }
 0x673   :  { %1109 = vmatprep.subr.bf16.mxu0 %v1494_v45  ;;  %1150 = vmatprep.subr.bf16.mxu1 %v1495_v46 }
 0x676   :  { %1110 = vmatpush1.bf16.msra.mxu0 %v1496_v47  ;;  %1151 = vmatpush1.bf16.msra.mxu1 %v1497_v48 }
 0x677   :  { %1111 = vmatprep.subr.bf16.mxu0 %v1498_v49  ;;  %1152 = vmatprep.subr.bf16.mxu1 %v1499_v50 }
 0x67a   :  { %1112 = vmatpush1.bf16.msra.mxu0 %v1500_v33  ;;  %1153 = vmatpush1.bf16.msra.mxu1 %v1501_v51 }
 0x67b   :  { %1113 = vmatprep.subr.bf16.mxu0 %v1502_v52  ;;  %1154 = vmatprep.subr.bf16.mxu1 %v1503_v2 }
 0x67e   :  { %1114 = vmatpush1.bf16.msra.mxu0 %v1504_v3  ;;  %1155 = vmatpush1.bf16.msra.mxu1 %v1505_v4 }
 0x734   :  { %v1011_v8 = vpop.f32.mrb[24].mxu0  ;;  %v1052_v9 = vpop.f32.mrb[24].mxu1 }
 0x735   :  { %v1059_v10 = vadd.f32 %v1011_v8, %v970_v5  ;;  %v1013_v11 = vpop.f32.mrb[25].mxu0  ;;  %v1054_v12 = vpop.f32.mrb[25].mxu1  ;;  %v1061_v24 = vadd.f32 %v1052_v9, %v972_v22 }
 0x736   :  { %v1060_v13 = vadd.f32 %v1013_v11, %v971_v7  ;;  %v1015_v14 = vpop.f32.mrb[26].mxu0  ;;  %v1056_v15 = vpop.f32.mrb[26].mxu1  ;;  %v1062_v21 = vadd.f32 %v1054_v12, %v973_v20 }
 0x737   :  { %v1281_v16 = vmul.f32 -1.442695, %v1059_v10  ;;  %v1016_v17 = vpop.f32.mrb[27].mxu0  ;;  %v1057_v18 = vpop.f32.mrb[27].mxu1 }
 0x738   :  { %v1282_v19 = vmul.f32 -1.442695, %v1060_v13  ;;  %v1283_v23 = vmul.f32 -1.442695, %v1062_v21 }
 0x739   :  { %1442 = vpow2.f32 %v1281_v16 }
 0x73a   :  { %1444 = vpow2.f32 %v1282_v19 }
 0x73b   :  { %1446 = vpow2.f32 %v1283_v23 }
 0x73c   :  { %1448 = vtanh.f32 %v1061_v24 }
 0x743   :  { %v1443_v25 = vpop.eup %1442 }
 0x744   :  { %v1445_v26 = vpop.eup %1444  ;;  %v1066_v27 = vadd.f32 1.0, %v1443_v25 }
 0x745   :  { %v1072_v28 = vadd.f32 1.0, %v1445_v26  ;;  %v1447_v29 = vpop.eup %1446 }
 0x746   :  { %1450 = vrcp.f32 %v1066_v27  ;;  %v1449_v30 = vpop.eup %1448  ;;  %v1079_v53 = vadd.f32 1.0, %v1447_v29 }
 0x747   :  { %1452 = vrcp.f32 %v1072_v28 }
 0x748   :  { %1454 = vrcp.f32 %v1079_v53 }
 0x750   :  { %v1451_v31 = vpop.eup %1450 }
 0x751   :  { %v1453_v32 = vpop.eup %1452  ;;  %v1083_v38 = vmul.f32 %v1451_v31, %v1449_v30 }
 0x752   :  { %v1082_v55 = vmul.f32 %v1453_v32, %v1950_v54  ;;  %v1455_v57 = vpop.eup %1454 }
 0x754   :  { %v1084_v56 = vadd.f32 %v1083_v38, %v1082_v55 }
 0x756   :  { %1456 = vtanh.f32 %v1084_v56 }
 0x760   :  { %v1457_v58 = vpop.eup %1456 }
 0x761   :  { %v1086_v59 = vmul.f32 %v1457_v58, %v1455_v57 }
 0x763   :  { %1090 = vst [vmem:[#allocation9 + $0x30] sm:$0xff] %v1086_v59  ;;  %v1098_v60 = vpack.c.bf16 %v1086_v59, %v1086_v59 }
 0x765   :  { %1132 = vmatmul.mubr.bf16.vlgmr.msra.gmra.mrb[28].mxu0 %v1098_v60  ;;  %1173 = vmatmul.mubr.bf16.vlgmr.msra.gmra.mrb[28].mxu1 %v1098_v60 }
 0x838   :  { %v1133_v63 = vpop.f32.mrb[28].mxu0  ;;  %v1174_v34 = vpop.f32.mrb[28].mxu1 }
 0x839   :  { %v1181_v1 = vadd.f32 %v1133_v63, %v1092_v61  ;;  %v1135_v35 = vpop.f32.mrb[29].mxu0  ;;  %v1176_v6 = vpop.f32.mrb[29].mxu1  ;;  %v1183_v46 = vadd.f32 %v1174_v34, %v1094_v44 }
 0x83a   :  { %v1182_v36 = vadd.f32 %v1135_v35, %v1093_v62  ;;  %v1137_v37 = vpop.f32.mrb[30].mxu0  ;;  %v1178_v54 = vpop.f32.mrb[30].mxu1  ;;  %v1184_v43 = vadd.f32 %v1176_v6, %v1095_v42 }
 0x83b   :  { %v1284_v39 = vmul.f32 -1.442695, %v1181_v1  ;;  %v1138_v40 = vpop.f32.mrb[31].mxu0  ;;  %v1179_v41 = vpop.f32.mrb[31].mxu1 }
 0x83c   :  { %v1285_v0 = vmul.f32 -1.442695, %v1182_v36  ;;  %v1286_v45 = vmul.f32 -1.442695, %v1184_v43 }
 0x83d   :  { %1458 = vpow2.f32 %v1284_v39 }
 0x83e   :  { %1460 = vpow2.f32 %v1285_v0 }
 0x83f   :  { %1462 = vpow2.f32 %v1286_v45 }
 0x840   :  { %1464 = vtanh.f32 %v1183_v46 }
 0x847   :  { %v1459_v47 = vpop.eup %1458 }
 0x848   :  { %v1461_v48 = vpop.eup %1460  ;;  %v1188_v49 = vadd.f32 1.0, %v1459_v47 }
 0x849   :  { %v1194_v50 = vadd.f32 1.0, %v1461_v48  ;;  %v1463_v33 = vpop.eup %1462 }
 0x84a   :  { %1466 = vrcp.f32 %v1188_v49  ;;  %v1465_v51 = vpop.eup %1464  ;;  %v1201_v4 = vadd.f32 1.0, %v1463_v33 }
 0x84b   :  { %1468 = vrcp.f32 %v1194_v50 }
 0x84c   :  { %1470 = vrcp.f32 %v1201_v4 }
 0x854   :  { %v1467_v52 = vpop.eup %1466 }
 0x855   :  { %v1469_v2 = vpop.eup %1468  ;;  %v1205_v3 = vmul.f32 %v1467_v52, %v1465_v51 }
 0x856   :  { %v1204_v5 = vmul.f32 %v1469_v2, %v1084_v56  ;;  %v1471_v8 = vpop.eup %1470 }
 0x858   :  { %v1206_v7 = vadd.f32 %v1205_v3, %v1204_v5 }
 0x85a   :  { %1472 = vtanh.f32 %v1206_v7 }
 0x864   :  { %v1473_v9 = vpop.eup %1472 }
 0x865   :  { %v1208_v10 = vmul.f32 %v1473_v9, %v1471_v8 }
 0x867   :  { %1212 = vst [vmem:[#allocation9 + $0x38] sm:$0xff] %v1208_v10 }
 0x868   :  { %1561 = shalt.err (!%p1558_p6)
}
 0x869   :  { %s1562_s12 = scalar_lea.hbm %s1970_s2, 1024 }
 0x86a   :  { %p1563_p7 = scmp.ne.s32.totalorder %s1970_s2, %s1562_s12  ;;  %p1566_p8 = scmp.lt.u32.totalorder %s1562_s12, %s1970_s2 }
 0x86c   :  { %p1568_p9 = pnand %p1566_p8, %p1563_p7 }
 0x86e   :  { %1571 = shalt.err (!%p1568_p9)
}
 0x86f   :  { %s1587_s17 = smov 128   ;;  %s1588_s18 = smov 8  }
 0x870   :  { %1224 = dma.vmem_to_hbm [thread:$0]  %s1219_s8, 1024, %s1970_s2, [#allocation6], %s1587_s17, %s1587_s17, %s1588_s18  }
 0x871   :  { %1576 = dma.done.wait [#allocation6], 1024  }
 0x872   :  { %1577 = vsyncadd [#allocation6], 4294966272 }
 0x873   :  { %1228 = vsyncpa [#allocation5], 1 }
 0x874   :  { %1229 = vsyncpa [#allocation8], 1 }
 0x875   :  { %1230 = vsyncpa [#allocation6], 1 }

</bundles_post_ra>
